<compile_context>
chip_gen: v7x
topology: tpu7x:2x2x1
jax: 0.10.0
libtpu: 0.0.40
codegen_flags: <defaults>
</compile_context>

<pallas_src>
import functools
import math

import jax
import jax.numpy as jnp
from jax.experimental import pallas as pl
from jax.experimental.pallas import tpu as pltpu

HIDDEN = 512
OUT = 2
OUT_PAD = 128               # pad the 2-wide output layer to a full 128-lane width
K_ALIGN = 256               # K tiles are multiples of this (MXU/layout friendly)
_STEP_OVERHEAD_BYTES = 400_000   # ~0.35 us of HBM BW; only used to pick the K tile
_MIB = 1024 * 1024


def _round_up(a, b):
    return (a + b - 1) // b * b


def _hw_config():
    """Generation-dependent defaults: K-split count, max K tile, VMEM cap."""
    kind = ""
    try:
        d = jax.devices()[0]
        if d.platform == "tpu":
            kind = str(getattr(d, "device_kind", "")).lower()
    except Exception:
        pass
    if "v7" in kind or "7x" in kind:
        # 2 TensorCores/chip (shard W1 streaming), but only 64 MiB VMEM per TC.
        return dict(splits=2, tk_max=12288, vmem_cap=48 * _MIB)
    # v5e / v6e (and fallback): one TensorCore, 128 MiB physical VMEM.
    return dict(splits=1, tk_max=8192, vmem_cap=100 * _MIB)


def _choose_tk(in_features, splits, tk_max):
    """Pick the K tile (multiple of 256) minimizing streamed bytes + step cost."""
    per_split = _round_up(max(in_features, 1), K_ALIGN * splits) // splits
    hi = max(K_ALIGN, min(tk_max, per_split))
    lo = max(K_ALIGN, min(hi, 2048))
    best_tk, best_cost = None, None
    for tk in range(lo, hi + 1, K_ALIGN):
        inp = _round_up(in_features, splits * tk)
        steps_per_split = inp // (splits * tk)
        # Per-TensorCore W1 bytes streamed + fixed per-grid-step overhead.
        cost = (inp // splits) * HIDDEN * 2 + steps_per_split * _STEP_OVERHEAD_BYTES
        if best_cost is None or cost <= best_cost:
            best_tk, best_cost = tk, cost
    return best_tk


# --------------------------------------------------------------------------- #
# Kernels
# --------------------------------------------------------------------------- #
def _fused_mlp_kernel(x_ref, w1_ref, b1_ref, w2_ref, b2_ref, w3_ref, b3_ref,
                      o_ref, acc_ref):
    """Single-K-split path: K-tiled x@W1 accumulation with the full epilogue
    (bias/ReLU -> L2 -> ReLU -> L3) fused into the last grid step."""
    k = pl.program_id(0)

    @pl.when(k == 0)
    def _():
        acc_ref[...] = jnp.zeros_like(acc_ref)

    # x is resident in VMEM as (nk, B, tk); W1 streams one (tk, 512) tile/step.
    acc_ref[...] += jnp.dot(x_ref[k], w1_ref[...],
                            preferred_element_type=jnp.float32)

    @pl.when(k == pl.num_programs(0) - 1)
    def _():
        h1 = jnp.maximum(acc_ref[...] + b1_ref[...], 0.0)
        h2 = jnp.dot(h1, w2_ref[...], preferred_element_type=jnp.float32) + b2_ref[...]
        h2 = jnp.maximum(h2, 0.0)
        logits = (jnp.dot(h2, w3_ref[...], preferred_element_type=jnp.float32)
                  + b3_ref[...])
        o_ref[...] = logits.astype(o_ref.dtype)


def _layer1_split_kernel(x_ref, w1_ref, o_ref, *, nk_per_split):
    """Multi-split path (v7x): axis 0 ('parallel') shards the K reduction across
    TensorCores; axis 1 walks that split's K tiles. Output block is the resident
    f32 accumulator for the split."""
    c = pl.program_id(0)
    k = pl.program_id(1)

    @pl.when(k == 0)
    def _():
        o_ref[...] = jnp.zeros_like(o_ref)

    o_ref[...] += jnp.dot(x_ref[c * nk_per_split + k], w1_ref[...],
                          preferred_element_type=jnp.float32)


def _epilogue_kernel(p_ref, b1_ref, w2_ref, b2_ref, w3_ref, b3_ref, o_ref):
    """Sum the per-split partials (generic over the split count), then
    bias/ReLU -> L2 -> ReLU -> L3."""
    h1 = jnp.maximum(jnp.sum(p_ref[...], axis=0) + b1_ref[...], 0.0)
    h2 = jnp.dot(h1, w2_ref[...], preferred_element_type=jnp.float32) + b2_ref[...]
    h2 = jnp.maximum(h2, 0.0)
    logits = (jnp.dot(h2, w3_ref[...], preferred_element_type=jnp.float32)
              + b3_ref[...])
    o_ref[...] = logits.astype(o_ref.dtype)


# --------------------------------------------------------------------------- #
# Host-side wrappers
# --------------------------------------------------------------------------- #
def prepare_params(w1, b1, w2, b2, w3, b3):
    """One-time parameter packing (hoisted out of the jitted forward):
    pad W1 along K and cast to bf16, lane-pad W3/b3 to 128, reshape biases."""
    in_features = w1.shape[0]
    cfg = _hw_config()
    tk = _choose_tk(in_features, cfg["splits"], cfg["tk_max"])
    inp = _round_up(in_features, cfg["splits"] * tk)   # padded K (zero rows are inert)

    w1p = jnp.pad(jnp.asarray(w1, jnp.float32),
                  ((0, inp - in_features), (0, 0))).astype(jnp.bfloat16)
    w3p = jnp.zeros((HIDDEN, OUT_PAD), jnp.float32).at[:, :OUT].set(
        jnp.asarray(w3, jnp.float32))
    b3p = jnp.zeros((1, OUT_PAD), jnp.float32).at[:, :OUT].set(
        jnp.asarray(b3, jnp.float32).reshape(1, OUT))

    arrays = dict(
        w1=w1p,
        b1=jnp.asarray(b1, jnp.float32).reshape(1, HIDDEN),
        w2=jnp.asarray(w2, jnp.float32),
        b2=jnp.asarray(b2, jnp.float32).reshape(1, HIDDEN),
        w3=w3p,
        b3=b3p,
    )
    static = dict(tk=tk, splits=cfg["splits"], vmem_cap=cfg["vmem_cap"],
                  in_features=in_features)
    return arrays, static


@functools.partial(jax.jit, static_argnames=("tk", "splits", "vmem_cap"))
def _forward_impl(x_nchw, w1, b1, w2, b2, w3, b3, *, tk, splits, vmem_cap):
    B = x_nchw.shape[0]
    x = x_nchw.reshape(B, -1)                  # nn.Flatten (row-major, like torch)
    IN = x.shape[1]
    INp = w1.shape[0]
    assert INp >= IN and INp % (splits * tk) == 0, (IN, INp, splits, tk)

    nk = INp // tk
    nk_per_split = nk // splits

    # Per-call x packing is tiny (~1.4 MB bf16 at IN=360K, B=2): pad K, cast to
    # bf16, and lay out as (nk, B, tk) so the kernel indexes K tiles in VMEM.
    x_p = jnp.pad(x, ((0, 0), (0, INp - IN))).astype(jnp.bfloat16)
    x_r = x_p.reshape(B, nk, tk).transpose(1, 0, 2)          # (nk, B, tk)

    # VMEM budget: resident x (sublane-padded, 2 bufs) + double-buffered W1 tile
    # + small resident params / accumulator / output.
    est = (2 * nk * _round_up(B, 8) * tk * 2
           + 2 * tk * HIDDEN * 2
           + 2 * (HIDDEN * HIDDEN + 4 * HIDDEN + HIDDEN * OUT_PAD + OUT_PAD) * 4
           + _round_up(B, 8) * (HIDDEN + OUT_PAD) * 4)
    vmem_limit = int(min(vmem_cap, max(32 * _MIB, est + 8 * _MIB)))

    cost = pl.CostEstimate(
        flops=2 * B * (INp * HIDDEN + HIDDEN * HIDDEN + HIDDEN * OUT_PAD),
        transcendentals=0,
        bytes_accessed=(INp * HIDDEN * 2            # W1 (bf16) — dominant term
                        + B * INp * 2               # x (bf16)
                        + HIDDEN * HIDDEN * 4       # W2
                        + splits * B * HIDDEN * 4   # partials / accumulator
                        + B * OUT_PAD * 4))

    small_specs = [
        pl.BlockSpec((1, HIDDEN), lambda *_: (0, 0)),        # b1
        pl.BlockSpec((HIDDEN, HIDDEN), lambda *_: (0, 0)),   # w2
        pl.BlockSpec((1, HIDDEN), lambda *_: (0, 0)),        # b2
        pl.BlockSpec((HIDDEN, OUT_PAD), lambda *_: (0, 0)),  # w3 (lane-padded)
        pl.BlockSpec((1, OUT_PAD), lambda *_: (0, 0)),       # b3
    ]

    if splits == 1:
        # Single TensorCore: one call, epilogue fused into the last K step.
        out_padded = pl.pallas_call(
            _fused_mlp_kernel,
            out_shape=jax.ShapeDtypeStruct((B, OUT_PAD), jnp.float32),
            grid_spec=pltpu.PrefetchScalarGridSpec(
                num_scalar_prefetch=0,
                grid=(nk,),
                in_specs=[
                    pl.BlockSpec((nk, B, tk), lambda k: (0, 0, 0)),   # x (resident)
                    pl.BlockSpec((tk, HIDDEN), lambda k: (k, 0)),     # W1 (streamed)
                ] + small_specs,
                out_specs=pl.BlockSpec((B, OUT_PAD), lambda k: (0, 0)),
                scratch_shapes=[pltpu.VMEM((B, HIDDEN), jnp.float32)],
            ),
            compiler_params=pltpu.CompilerParams(
                dimension_semantics=("arbitrary",),
                vmem_limit_bytes=vmem_limit),
            cost_estimate=cost,
        )(x_r, w1, b1, w2, b2, w3, b3)
    else:
        # v7x: split the K reduction across both TensorCores, then a tiny
        # epilogue call sums the partials and runs the rest of the MLP.
        partials = pl.pallas_call(
            functools.partial(_layer1_split_kernel, nk_per_split=nk_per_split),
            out_shape=jax.ShapeDtypeStruct((splits, B, HIDDEN), jnp.float32),
            grid_spec=pltpu.PrefetchScalarGridSpec(
                num_scalar_prefetch=0,
                grid=(splits, nk_per_split),
                in_specs=[
                    pl.BlockSpec((nk, B, tk), lambda c, k: (0, 0, 0)),          # x
                    pl.BlockSpec((tk, HIDDEN),
                                 lambda c, k: (c * nk_per_split + k, 0)),       # W1
                ],
                out_specs=pl.BlockSpec((None, B, HIDDEN), lambda c, k: (c, 0, 0)),
            ),
            compiler_params=pltpu.CompilerParams(
                dimension_semantics=("parallel", "arbitrary"),
                vmem_limit_bytes=vmem_limit),
            cost_estimate=cost,
        )(x_r, w1)

        out_padded = pl.pallas_call(
            _epilogue_kernel,
            out_shape=jax.ShapeDtypeStruct((B, OUT_PAD), jnp.float32),
        )(partials, b1, w2, b2, w3, b3)

    return out_padded[:, :OUT]


def mlp_forward(x_nchw, prepared):
    """x_nchw: (B, C, H, W) float32. Returns (B, 2) float32 logits."""
    arrays, static = prepared
    in_feats = math.prod(x_nchw.shape[1:])
    assert in_feats == static["in_features"], (in_feats, static["in_features"])
    return _forward_impl(
        x_nchw, arrays["w1"], arrays["b1"], arrays["w2"], arrays["b2"],
        arrays["w3"], arrays["b3"],
        tk=static["tk"], splits=static["splits"], vmem_cap=static["vmem_cap"])


# --------------------------------------------------------------------------- #
# Init / reference / test
# --------------------------------------------------------------------------- #
def init_params(key, in_features):
    """Deterministic parameter init (PyTorch-Linear-style uniform bounds)."""
    ks = jax.random.split(key, 6)

    def lin(kw, kb, fan_in, fan_out):
        bound = 1.0 / jnp.sqrt(fan_in)
        w = jax.random.uniform(kw, (fan_in, fan_out), jnp.float32, -bound, bound)
        b = jax.random.uniform(kb, (fan_out,), jnp.float32, -bound, bound)
        return w, b

    w1, b1 = lin(ks[0], ks[1], in_features, HIDDEN)
    w2, b2 = lin(ks[2], ks[3], HIDDEN, HIDDEN)
    w3, b3 = lin(ks[4], ks[5], HIDDEN, OUT)
    return w1, b1, w2, b2, w3, b3


def reference_forward(x_nchw, w1, b1, w2, b2, w3, b3):
    """Pure-JAX reference modelling the kernel's bf16 storage of x and W1.
    (Intentional deviation from pure f32 PyTorch: bf16 streaming halves the
    dominant W1 HBM traffic; accumulation stays f32.)"""
    hp = jax.lax.Precision.HIGHEST
    x = x_nchw.reshape(x_nchw.shape[0], -1)
    x = x.astype(jnp.bfloat16).astype(jnp.float32)
    w1c = w1.astype(jnp.bfloat16).astype(jnp.float32)
    h = jnp.maximum(jnp.dot(x, w1c, precision=hp) + b1, 0.0)
    h = jnp.maximum(jnp.dot(h, w2, precision=hp) + b2, 0.0)
    return jnp.dot(h, w3, precision=hp) + b3


if __name__ == "__main__":
    key = jax.random.PRNGKey(0)
    kx, kp = jax.random.split(key)

    # Small, module-consistent input: NCHW with 4 channels.
    # (The real module uses (B, 4, 300, 300) -> 360000 features; the padded-K /
    #  tile-selection path in prepare_params handles that shape too.)
    B, C, H, W = 2, 4, 16, 16
    x = jax.random.normal(kx, (B, C, H, W), jnp.float32)

    raw_params = init_params(kp, C * H * W)
    prepared = prepare_params(*raw_params)          # one-time W1 repack (hoisted)

    logits = jax.block_until_ready(mlp_forward(x, prepared))

    ref = reference_forward(x, *raw_params)
    assert logits.shape == (B, OUT), logits.shape
    max_err = jnp.max(jnp.abs(logits - ref))
    assert jnp.allclose(logits, ref, atol=2e-3, rtol=2e-3), f"max abs err {max_err}"

    print("KERNEL_OK")
</pallas_src>

<mosaic_0001>
module attributes {stable_mosaic.version = 11 : i64} {
  func.func @_fused_mlp_kernel(%arg0: i32, %arg1: memref<1x2x1024xbf16, #tpu.memory_space<vmem>>, %arg2: memref<1024x512xbf16, #tpu.memory_space<vmem>>, %arg3: memref<1x512xf32, #tpu.memory_space<vmem>>, %arg4: memref<512x512xf32, #tpu.memory_space<vmem>>, %arg5: memref<1x512xf32, #tpu.memory_space<vmem>>, %arg6: memref<512x128xf32, #tpu.memory_space<vmem>>, %arg7: memref<1x128xf32, #tpu.memory_space<vmem>>, %arg8: memref<2x128xf32, #tpu.memory_space<vmem>>, %arg9: memref<2x512xf32, #tpu.memory_space<vmem>>) attributes {dimension_semantics = [#tpu.dimension_semantics<arbitrary>], iteration_bounds = array<i64: 1>, scalar_prefetch = 0 : i64, scratch_operands = 1 : i64, tpu.core_type = #tpu.core_type<tc>, window_params = [{pipeline_mode = #tpu.pipeline_mode<synchronous>, transform_indices = @transform_0, window_bounds = array<i64: 1, 2, 1024>}, {transform_indices = @transform_1, window_bounds = array<i64: 1024, 512>}, {pipeline_mode = #tpu.pipeline_mode<synchronous>, transform_indices = @transform_2, window_bounds = array<i64: 1, 512>}, {pipeline_mode = #tpu.pipeline_mode<synchronous>, transform_indices = @transform_3, window_bounds = array<i64: 512, 512>}, {pipeline_mode = #tpu.pipeline_mode<synchronous>, transform_indices = @transform_4, window_bounds = array<i64: 1, 512>}, {pipeline_mode = #tpu.pipeline_mode<synchronous>, transform_indices = @transform_5, window_bounds = array<i64: 512, 128>}, {pipeline_mode = #tpu.pipeline_mode<synchronous>, transform_indices = @transform_6, window_bounds = array<i64: 1, 128>}, {pipeline_mode = #tpu.pipeline_mode<synchronous>, transform_indices = @transform_7, window_bounds = array<i64: 2, 128>}]} {
    %c0_i32 = arith.constant 0 : i32
    %0 = arith.cmpi eq, %arg0, %c0_i32 : i32
    %1 = arith.extui %0 : i1 to i32
    %c0_i32_0 = arith.constant 0 : i32
    %2 = arith.cmpi ne, %1, %c0_i32_0 : i32
    scf.if %2 {
      %cst_10 = arith.constant 0.000000e+00 : f32
      %14 = vector.broadcast %cst_10 : f32 to vector<2x512xf32>
      %c0_11 = arith.constant 0 : index
      %c0_12 = arith.constant 0 : index
      %15 = vector.load %arg9[%c0_11, %c0_12] : memref<2x512xf32, #tpu.memory_space<vmem>>, vector<2x512xf32>
      tpu.vector_store %arg9[%c0_11, %c0_12], %14 {strides = array<i32>} : memref<2x512xf32, #tpu.memory_space<vmem>>, vector<2x512xf32>,
    } else {
    }
    %c0 = arith.constant 0 : index
    %c0_1 = arith.constant 0 : index
    %3 = vector.load %arg9[%c0, %c0_1] : memref<2x512xf32, #tpu.memory_space<vmem>>, vector<2x512xf32>
    %4 = arith.index_cast %arg0 : i32 to index
    %c0_2 = arith.constant 0 : index
    %c0_3 = arith.constant 0 : index
    %5 = vector.load %arg1[%4, %c0_2, %c0_3] : memref<1x2x1024xbf16, #tpu.memory_space<vmem>>, vector<1x2x1024xbf16>
    %6 = vector.shape_cast %5 : vector<1x2x1024xbf16> to vector<2x1024xbf16>
    %c0_4 = arith.constant 0 : index
    %c0_5 = arith.constant 0 : index
    %7 = vector.load %arg2[%c0_4, %c0_5] : memref<1024x512xbf16, #tpu.memory_space<vmem>>, vector<1024x512xbf16>
    %cst = arith.constant dense<0.000000e+00> : vector<2x512xf32>
    %8 = tpu.matmul %6, %7, %cst {dimension_numbers = #tpu.dot_dimension_numbers<[1], [0], [0], [1], [0, 0, 1, 1], [], []>} : vector<2x1024xbf16>, vector<1024x512xbf16>, vector<2x512xf32> -> vector<2x512xf32>
    %9 = arith.addf %3, %8 : vector<2x512xf32>
    %c0_6 = arith.constant 0 : index
    %c0_7 = arith.constant 0 : index
    %10 = vector.load %arg9[%c0_6, %c0_7] : memref<2x512xf32, #tpu.memory_space<vmem>>, vector<2x512xf32>
    tpu.vector_store %arg9[%c0_6, %c0_7], %9 {strides = array<i32>} : memref<2x512xf32, #tpu.memory_space<vmem>>, vector<2x512xf32>,
    %c0_i32_8 = arith.constant 0 : i32
    %11 = arith.cmpi eq, %arg0, %c0_i32_8 : i32
    %12 = arith.extui %11 : i1 to i32
    %c0_i32_9 = arith.constant 0 : i32
    %13 = arith.cmpi ne, %12, %c0_i32_9 : i32
    scf.if %13 {
      %c0_10 = arith.constant 0 : index
      %c0_11 = arith.constant 0 : index
      %14 = vector.load %arg9[%c0_10, %c0_11] : memref<2x512xf32, #tpu.memory_space<vmem>>, vector<2x512xf32>
      %c0_12 = arith.constant 0 : index
      %c0_13 = arith.constant 0 : index
      %15 = vector.load %arg3[%c0_12, %c0_13] : memref<1x512xf32, #tpu.memory_space<vmem>>, vector<1x512xf32>
      %16 = vector.broadcast %15 : vector<1x512xf32> to vector<2x512xf32>
      %17 = arith.addf %14, %16 : vector<2x512xf32>
      %cst_14 = arith.constant 0.000000e+00 : f32
      %18 = vector.broadcast %cst_14 : f32 to vector<2x512xf32>
      %19 = arith.maximumf %17, %18 : vector<2x512xf32>
      %c0_15 = arith.constant 0 : index
      %c0_16 = arith.constant 0 : index
      %20 = vector.load %arg4[%c0_15, %c0_16] : memref<512x512xf32, #tpu.memory_space<vmem>>, vector<512x512xf32>
      %cst_17 = arith.constant dense<0.000000e+00> : vector<2x512xf32>
      %21 = tpu.matmul %19, %20, %cst_17 {dimension_numbers = #tpu.dot_dimension_numbers<[1], [0], [0], [1], [0, 0, 1, 1], [], []>} : vector<2x512xf32>, vector<512x512xf32>, vector<2x512xf32> -> vector<2x512xf32>
      %c0_18 = arith.constant 0 : index
      %c0_19 = arith.constant 0 : index
      %22 = vector.load %arg5[%c0_18, %c0_19] : memref<1x512xf32, #tpu.memory_space<vmem>>, vector<1x512xf32>
      %23 = vector.broadcast %22 : vector<1x512xf32> to vector<2x512xf32>
      %24 = arith.addf %21, %23 : vector<2x512xf32>
      %cst_20 = arith.constant 0.000000e+00 : f32
      %25 = vector.broadcast %cst_20 : f32 to vector<2x512xf32>
      %26 = arith.maximumf %24, %25 : vector<2x512xf32>
      %c0_21 = arith.constant 0 : index
      %c0_22 = arith.constant 0 : index
      %27 = vector.load %arg6[%c0_21, %c0_22] : memref<512x128xf32, #tpu.memory_space<vmem>>, vector<512x128xf32>
      %cst_23 = arith.constant dense<0.000000e+00> : vector<2x128xf32>
      %28 = tpu.matmul %26, %27, %cst_23 {dimension_numbers = #tpu.dot_dimension_numbers<[1], [0], [0], [1], [0, 0, 1, 1], [], []>} : vector<2x512xf32>, vector<512x128xf32>, vector<2x128xf32> -> vector<2x128xf32>
      %c0_24 = arith.constant 0 : index
      %c0_25 = arith.constant 0 : index
      %29 = vector.load %arg7[%c0_24, %c0_25] : memref<1x128xf32, #tpu.memory_space<vmem>>, vector<1x128xf32>
      %30 = vector.broadcast %29 : vector<1x128xf32> to vector<2x128xf32>
      %31 = arith.addf %28, %30 : vector<2x128xf32>
      %c0_26 = arith.constant 0 : index
      %c0_27 = arith.constant 0 : index
      %32 = vector.load %arg8[%c0_26, %c0_27] : memref<2x128xf32, #tpu.memory_space<vmem>>, vector<2x128xf32>
      tpu.vector_store %arg8[%c0_26, %c0_27], %31 {strides = array<i32>} : memref<2x128xf32, #tpu.memory_space<vmem>>, vector<2x128xf32>,
    } else {
    }
    return
  }
  func.func @transform_0(%arg0: i32) -> (i32, i32, i32) {
    %c0_i32 = arith.constant 0 : i32
    %c0_i32_0 = arith.constant 0 : i32
    %c0_i32_1 = arith.constant 0 : i32
    %c0_i32_2 = arith.constant 0 : i32
    return %c0_i32, %c0_i32_0, %c0_i32_1 : i32, i32, i32
  }
  func.func @transform_1(%arg0: i32) -> (i32, i32) {
    %c0_i32 = arith.constant 0 : i32
    %c0_i32_0 = arith.constant 0 : i32
    return %arg0, %c0_i32 : i32, i32
  }
  func.func @transform_2(%arg0: i32) -> (i32, i32) {
    %c0_i32 = arith.constant 0 : i32
    %c0_i32_0 = arith.constant 0 : i32
    %c0_i32_1 = arith.constant 0 : i32
    return %c0_i32, %c0_i32_0 : i32, i32
  }
  func.func @transform_3(%arg0: i32) -> (i32, i32) {
    %c0_i32 = arith.constant 0 : i32
    %c0_i32_0 = arith.constant 0 : i32
    %c0_i32_1 = arith.constant 0 : i32
    return %c0_i32, %c0_i32_0 : i32, i32
  }
  func.func @transform_4(%arg0: i32) -> (i32, i32) {
    %c0_i32 = arith.constant 0 : i32
    %c0_i32_0 = arith.constant 0 : i32
    %c0_i32_1 = arith.constant 0 : i32
    return %c0_i32, %c0_i32_0 : i32, i32
  }
  func.func @transform_5(%arg0: i32) -> (i32, i32) {
    %c0_i32 = arith.constant 0 : i32
    %c0_i32_0 = arith.constant 0 : i32
    %c0_i32_1 = arith.constant 0 : i32
    return %c0_i32, %c0_i32_0 : i32, i32
  }
  func.func @transform_6(%arg0: i32) -> (i32, i32) {
    %c0_i32 = arith.constant 0 : i32
    %c0_i32_0 = arith.constant 0 : i32
    %c0_i32_1 = arith.constant 0 : i32
    return %c0_i32, %c0_i32_0 : i32, i32
  }
  func.func @transform_7(%arg0: i32) -> (i32, i32) {
    %c0_i32 = arith.constant 0 : i32
    %c0_i32_0 = arith.constant 0 : i32
    %c0_i32_1 = arith.constant 0 : i32
    return %c0_i32, %c0_i32_0 : i32, i32
  }
}

</mosaic_0001>

<bundles_post_ra>
// kernel: _forward_impl.1
= control target key start
LH: loop header
LB: loop body
LE: loop exit
PB: predicated region body
PF: predicated region fallthrough
CT: control target
= control target key end

     0   :  { %12 = vsyncpa [#allocation4], 0  ;;  %s4219_s0 = inlined_call_operand.vmem [shape: bf16[1,2,1024], index: 0, kind: input, shape index: {}]   ;;  %s4220_s1 = inlined_call_operand.hbm [shape: bf16[1024,512], index: 1, kind: input, shape index: {}]   ;;  %s4221_s2 = inlined_call_operand.vmem [shape: f32[1,512], index: 2, kind: input, shape index: {}]   ;;  %s4222_s3 = inlined_call_operand.hbm [shape: f32[512,512], index: 3, kind: input, shape index: {}]   ;;  %s4223_s4 = inlined_call_operand.vmem [shape: f32[1,512], index: 4, kind: input, shape index: {}]   ;;  %s4224_s5 = inlined_call_operand.hbm [shape: f32[512,128], index: 5, kind: input, shape index: {}]   ;;  %s4225_s6 = inlined_call_operand.vmem [shape: f32[1,128], index: 6, kind: input, shape index: {}]   ;;  %s4226_s7 = inlined_call_operand.hbm [shape: f32[2,128], index: 7, kind: output, shape index: {}]  }
   0x1   :  { %13 = vsyncpa [#allocation7], 0 }
   0x2   :  { %14 = vsyncpa [#allocation5], 0  ;;  %s4051_s24 = smov [#allocation6]   ;;  %s3957_s28 = scalar_lea.hbm %s4222_s3, 32768 }
   0x3   :  { %s36_s25 = sshll.u32 %s4051_s24, 4  ;;  %p3958_p0 = scmp.ne.s32.totalorder %s4222_s3, %s3957_s28  ;;  %s37_s25 = int_to_ptr.vmem [resolvable:$true] %s36_s25 }
   0x4   :  { %p3961_p1 = scmp.lt.u32.totalorder %s3957_s28, %s4222_s3 }
   0x6   :  { %p3963_p2 = pnand %p3961_p1, %p3958_p0 }
   0x8   :  { %3966 = shalt.err (!%p3963_p2)
}
   0x9   :  { %s3967_s10 = scalar_lea.vmem %s37_s25, 32768  ;;  %p3972_p4 = scmp.lt.s32.totalorder %s37_s25, %s37_s25 }
   0xa   :  { %p3968_p3 = scmp.ne.s32.totalorder %s37_s25, %s3967_s10  ;;  %p3973_p5 = scmp.lt.s32.totalorder %s3967_s10, %s3967_s10 }
   0xc   :  { %p3974_p6 = por %p3973_p5, %p3972_p4 }
   0xe   :  { %p3975_p7 = pnand %p3974_p6, %p3968_p3 }
  0x10   :  { %3978 = shalt.err (!%p3975_p7)
}
  0x11   :  { %s4052_s11 = smov 512   ;;  %s4053_s12 = smov 32  }
  0x12   :  { %42 = dma.hbm_to_vmem [thread:$0]  %s4222_s3, 32768, %s37_s25, [#allocation7], %s4052_s11, %s4052_s11, %s4053_s12  }
  0x13   :  { %s4054_s15 = smov [#allocation3]   ;;  %s3979_s19 = scalar_lea.hbm %s4220_s1, 32768 }
  0x14   :  { %s22_s16 = sshll.u32 %s4054_s15, 4  ;;  %p3980_p8 = scmp.ne.s32.totalorder %s4220_s1, %s3979_s19  ;;  %s23_s16 = int_to_ptr.vmem [resolvable:$true] %s22_s16 }
  0x15   :  { %p3983_p9 = scmp.lt.u32.totalorder %s3979_s19, %s4220_s1 }
  0x17   :  { %p3985_p10 = pnand %p3983_p9, %p3980_p8 }
  0x19   :  { %3988 = shalt.err (!%p3985_p10)
}
  0x1a   :  { %s3989_s24 = scalar_lea.vmem %s23_s16, 32768  ;;  %p3994_p12 = scmp.lt.s32.totalorder %s23_s16, %s23_s16 }
  0x1b   :  { %p3990_p11 = scmp.ne.s32.totalorder %s23_s16, %s3989_s24  ;;  %p3995_p13 = scmp.lt.s32.totalorder %s3989_s24, %s3989_s24 }
  0x1d   :  { %p3996_p0 = por %p3995_p13, %p3994_p12 }
  0x1f   :  { %p3997_p1 = pnand %p3996_p0, %p3990_p11 }
  0x21   :  { %4000 = shalt.err (!%p3997_p1)
}
  0x22   :  { %s4055_s3 = smov 256   ;;  %s4056_s25 = smov 16  }
  0x23   :  { %28 = dma.hbm_to_vmem [thread:$0]  %s4220_s1, 32768, %s23_s16, [#allocation4], %s4055_s3, %s4055_s3, %s4056_s25  }
  0x24   :  { %s4057_s28 = smov [#allocation8]   ;;  %s4001_s9 = scalar_lea.hbm %s4224_s5, 8192 }
  0x25   :  { %s50_s29 = sshll.u32 %s4057_s28, 4  ;;  %p4002_p2 = scmp.ne.s32.totalorder %s4224_s5, %s4001_s9  ;;  %s51_s29 = int_to_ptr.vmem [resolvable:$true] %s50_s29 }
  0x26   :  { %p4005_p3 = scmp.lt.u32.totalorder %s4001_s9, %s4224_s5 }
  0x28   :  { %p4007_p4 = pnand %p4005_p3, %p4002_p2 }
  0x2a   :  { %4010 = shalt.err (!%p4007_p4)
}
  0x2b   :  { %s4011_s14 = scalar_lea.vmem %s51_s29, 8192  ;;  %p4016_p6 = scmp.lt.s32.totalorder %s51_s29, %s51_s29 }
  0x2c   :  { %p4012_p5 = scmp.ne.s32.totalorder %s51_s29, %s4011_s14  ;;  %p4017_p7 = scmp.lt.s32.totalorder %s4011_s14, %s4011_s14 }
  0x2e   :  { %p4018_p8 = por %p4017_p7, %p4016_p6 }
  0x30   :  { %p4019_p9 = pnand %p4018_p8, %p4012_p5 }
  0x32   :  { %4022 = shalt.err (!%p4019_p9)
}
  0x33   :  { %s4058_s1 = smov 128   ;;  %s4059_s15 = smov 8  }
  0x34   :  { %56 = dma.hbm_to_vmem [thread:$0]  %s4224_s5, 8192, %s51_s29, [#allocation7], %s4058_s1, %s4058_s1, %s4059_s15  }
  0x35   :  { %4045 = dma.done.wait [#allocation4], 32768  }
  0x36   :  { %4046 = vsyncadd [#allocation4], 4294934528 }
  0x37   :  { %4047 = dma.done.wait [#allocation7], 40960  }
  0x38   :  { %4048 = vsyncadd [#allocation7], 4294926336  ;;  %v3572_v0 = vld [vmem:[#allocation3 + $0x4] ss:$16 sps:$4 sm:$0xff]   ;;  %v3574_v1 = vld [vmem:[#allocation3 + $0xc] ss:$16 sps:$4 sm:$0xff]   ;;  %v338_v38 = vlaneseq }
  0x39   :  { %1671 = vmatprep.subr.bf16.mxu0 %v3572_v0  ;;  %v3576_v2 = vld [vmem:[#allocation3] ss:$16 sps:$4 sm:$0xff]   ;;  %v3577_v3 = vld [vmem:[#allocation3 + $0x8] ss:$16 sps:$4 sm:$0xff]   ;;  %1835 = vmatprep.subr.bf16.mxu1 %v3574_v1  ;;  %v3578_v4 = vld [vmem:[#allocation3 + $0x24] ss:$16 sps:$4 sm:$0xff]  }
  0x3a   :  { %1672 = vmatpush1.bf16.msra.mxu0 %v3576_v2  ;;  %1836 = vmatpush1.bf16.msra.mxu1 %v3577_v3  ;;  %v3580_v5 = vld [vmem:[#allocation3 + $0x2c] ss:$16 sps:$4 sm:$0xff]   ;;  %v3582_v6 = vld [vmem:[#allocation3 + $0x20] ss:$16 sps:$4 sm:$0xff]   ;;  %v3583_v7 = vld [vmem:[#allocation3 + $0x28] ss:$16 sps:$4 sm:$0xff]  }
  0x3b   :  { %1673 = vmatprep.subr.bf16.mxu0 %v3578_v4  ;;  %1837 = vmatprep.subr.bf16.mxu1 %v3580_v5  ;;  %v3584_v8 = vld [vmem:[#allocation3 + $0x44] ss:$16 sps:$4 sm:$0xff]   ;;  %v3586_v9 = vld [vmem:[#allocation3 + $0x4c] ss:$16 sps:$4 sm:$0xff]   ;;  %v3588_v10 = vld [vmem:[#allocation3 + $0x40] ss:$16 sps:$4 sm:$0xff]  }
  0x3c   :  { %v3589_v11 = vld [vmem:[#allocation3 + $0x48] ss:$16 sps:$4 sm:$0xff]   ;;  %v3590_v12 = vld [vmem:[#allocation3 + $0x64] ss:$16 sps:$4 sm:$0xff]   ;;  %v3592_v13 = vld [vmem:[#allocation3 + $0x6c] ss:$16 sps:$4 sm:$0xff]  }
  0x3d   :  { %v3594_v14 = vld [vmem:[#allocation3 + $0x60] ss:$16 sps:$4 sm:$0xff]   ;;  %v3595_v15 = vld [vmem:[#allocation3 + $0x68] ss:$16 sps:$4 sm:$0xff]   ;;  %v3596_v16 = vld [vmem:[#allocation3 + $0x84] ss:$16 sps:$4 sm:$0xff]  }
  0x3e   :  { %1674 = vmatpush1.bf16.msra.mxu0 %v3582_v6  ;;  %1838 = vmatpush1.bf16.msra.mxu1 %v3583_v7  ;;  %v3598_v17 = vld [vmem:[#allocation3 + $0x8c] ss:$16 sps:$4 sm:$0xff]   ;;  %v3600_v18 = vld [vmem:[#allocation3 + $0x80] ss:$16 sps:$4 sm:$0xff]   ;;  %v3601_v19 = vld [vmem:[#allocation3 + $0x88] ss:$16 sps:$4 sm:$0xff]  }
  0x3f   :  { %1675 = vmatprep.subr.bf16.mxu0 %v3584_v8  ;;  %1839 = vmatprep.subr.bf16.mxu1 %v3586_v9  ;;  %v3602_v20 = vld [vmem:[#allocation3 + $0xa4] ss:$16 sps:$4 sm:$0xff]   ;;  %v3604_v21 = vld [vmem:[#allocation3 + $0xac] ss:$16 sps:$4 sm:$0xff]   ;;  %v3606_v22 = vld [vmem:[#allocation3 + $0xa0] ss:$16 sps:$4 sm:$0xff]  }
  0x40   :  { %v3607_v23 = vld [vmem:[#allocation3 + $0xa8] ss:$16 sps:$4 sm:$0xff]   ;;  %v3608_v24 = vld [vmem:[#allocation3 + $0xc4] ss:$16 sps:$4 sm:$0xff]   ;;  %v3610_v25 = vld [vmem:[#allocation3 + $0xcc] ss:$16 sps:$4 sm:$0xff]  }
  0x41   :  { %v3612_v26 = vld [vmem:[#allocation3 + $0xc0] ss:$16 sps:$4 sm:$0xff]   ;;  %v3613_v27 = vld [vmem:[#allocation3 + $0xc8] ss:$16 sps:$4 sm:$0xff]   ;;  %v3614_v28 = vld [vmem:[#allocation3 + $0xe4] ss:$16 sps:$4 sm:$0xff]  }
  0x42   :  { %1676 = vmatpush1.bf16.msra.mxu0 %v3588_v10  ;;  %1840 = vmatpush1.bf16.msra.mxu1 %v3589_v11  ;;  %v3616_v29 = vld [vmem:[#allocation3 + $0xec] ss:$16 sps:$4 sm:$0xff]   ;;  %v3618_v30 = vld [vmem:[#allocation3 + $0xe0] ss:$16 sps:$4 sm:$0xff]   ;;  %v3619_v31 = vld [vmem:[#allocation3 + $0xe8] ss:$16 sps:$4 sm:$0xff]  }
  0x43   :  { %1677 = vmatprep.subr.bf16.mxu0 %v3590_v12  ;;  %1841 = vmatprep.subr.bf16.mxu1 %v3592_v13  ;;  %v3620_v32 = vld [vmem:[#allocation3 + $0x104] ss:$16 sps:$4 sm:$0xff]   ;;  %v3622_v33 = vld [vmem:[#allocation3 + $0x10c] ss:$16 sps:$4 sm:$0xff]   ;;  %v3624_v34 = vld [vmem:[#allocation3 + $0x100] ss:$16 sps:$4 sm:$0xff]  }
  0x44   :  { %v3625_v35 = vld [vmem:[#allocation3 + $0x108] ss:$16 sps:$4 sm:$0xff]   ;;  %v4060_v36 = vmov 1966171168   ;;  %v3626_v39 = vld [vmem:[#allocation3 + $0x124] ss:$16 sps:$4 sm:$0xff]  }
  0x45   :  { %v336_v37 = vunpack.c.l.s4 %v4060_v36  ;;  %v3628_v40 = vld [vmem:[#allocation3 + $0x12c] ss:$16 sps:$4 sm:$0xff]   ;;  %v3630_v41 = vld [vmem:[#allocation3 + $0x120] ss:$16 sps:$4 sm:$0xff]   ;;  %v4139_v43 = vshrl.u32 %v338_v38, 7  ;;  %s4062_s22 = smov [#allocation9]  }
  0x46   :  { %1678 = vmatpush1.bf16.msra.mxu0 %v3594_v14  ;;  %1842 = vmatpush1.bf16.msra.mxu1 %v3595_v15  ;;  %v3631_v44 = vld [vmem:[#allocation3 + $0x128] ss:$16 sps:$4 sm:$0xff]   ;;  %v3632_v45 = vld [vmem:[#allocation3 + $0x144] ss:$16 sps:$4 sm:$0xff]   ;;  %v3634_v46 = vld [vmem:[#allocation3 + $0x14c] ss:$16 sps:$4 sm:$0xff]  }
  0x47   :  { %1679 = vmatprep.subr.bf16.mxu0 %v3596_v16  ;;  %1843 = vmatprep.subr.bf16.mxu1 %v3598_v17  ;;  %v337_v42 = vunpack.c.0.s8 %v336_v37  ;;  %v3636_v47 = vld [vmem:[#allocation3 + $0x140] ss:$16 sps:$4 sm:$0xff]   ;;  %v3637_v48 = vld [vmem:[#allocation3 + $0x148] ss:$16 sps:$4 sm:$0xff]   ;;  %v3638_v50 = vld [vmem:[#allocation3 + $0x164] ss:$16 sps:$4 sm:$0xff]  }
  0x48   :  { %v3640_v51 = vld [vmem:[#allocation3 + $0x16c] ss:$16 sps:$4 sm:$0xff]   ;;  %v76_v52 = vld [vmem:[%s4219_s0] sm:$0xff]  ;;  %v3643_v55 = vld [vmem:[#allocation3 + $0x168] ss:$16 sps:$4 sm:$0xff]   ;;  %s2871_s23 = sshll.u32 %s4062_s22, 4  ;;  %s2872_s23 = int_to_ptr.vmem [resolvable:$true] %s2871_s23 }
  0x49   :  { %v4142_v49 = vsub.s32 %v337_v42, %v4139_v43  ;;  %v3642_v53 = vld [vmem:[#allocation3 + $0x160] ss:$16 sps:$4 sm:$0xff]   ;;  %v3644_v56 = vld [vmem:[#allocation3 + $0x184] ss:$16 sps:$4 sm:$0xff]   ;;  %v3646_v57 = vld [vmem:[#allocation3 + $0x18c] ss:$16 sps:$4 sm:$0xff]   ;;  %v334_v9 = vcombine.high %v76_v52, %v76_v52  ;;  %p4028_p11 = scmp.lt.s32.totalorder %s2872_s23, %s2872_s23 }
  0x4a   :  { %1680 = vmatpush1.bf16.msra.mxu0 %v3600_v18  ;;  %1844 = vmatpush1.bf16.msra.mxu1 %v3601_v19  ;;  %v3648_v59 = vld [vmem:[#allocation3 + $0x180] ss:$16 sps:$4 sm:$0xff]   ;;  %v3649_v61 = vld [vmem:[#allocation3 + $0x188] ss:$16 sps:$4 sm:$0xff]   ;;  %v3650_v62 = vld [vmem:[#allocation3 + $0x1a4] ss:$16 sps:$4 sm:$0xff]  }
  0x4b   :  { %1681 = vmatprep.subr.bf16.mxu0 %v3602_v20  ;;  %1845 = vmatprep.subr.bf16.mxu1 %v3604_v21  ;;  %v341_v54 = vrot.slane %v76_v52, %v4142_v49  ;;  %v3652_v63 = vld [vmem:[#allocation3 + $0x1ac] ss:$16 sps:$4 sm:$0xff]   ;;  %v3654_v0 = vld [vmem:[#allocation3 + $0x1a0] ss:$16 sps:$4 sm:$0xff]   ;;  %v3655_v1 = vld [vmem:[#allocation3 + $0x1a8] ss:$16 sps:$4 sm:$0xff]   ;;  %v348_v13 = vrot.slane %v334_v9, %v4142_v49 }
  0x4c   :  { %v3656_v2 = vld [vmem:[#allocation3 + $0x1c4] ss:$16 sps:$4 sm:$0xff]   ;;  %v3658_v3 = vld [vmem:[#allocation3 + $0x1cc] ss:$16 sps:$4 sm:$0xff]   ;;  %v3660_v4 = vld [vmem:[#allocation3 + $0x1c0] ss:$16 sps:$4 sm:$0xff]  }
  0x4d   :  { %v349_v58 = vcombine.high %v341_v54, %v341_v54  ;;  %v3661_v5 = vld [vmem:[#allocation3 + $0x1c8] ss:$16 sps:$4 sm:$0xff]   ;;  %v3662_v6 = vld [vmem:[#allocation3 + $0x1e4] ss:$16 sps:$4 sm:$0xff]   ;;  %v3664_v7 = vld [vmem:[#allocation3 + $0x1ec] ss:$16 sps:$4 sm:$0xff]   ;;  %v4151_v15 = vrot.slane %v341_v54, %v4142_v49  ;;  %v350_v16 = vcombine.high %v348_v13, %v348_v13  ;;  %v4157_v21 = vrot.slane %v348_v13, %v4142_v49 }
  0x4e   :  { %1682 = vmatpush1.bf16.msra.mxu0 %v3606_v22  ;;  %1846 = vmatpush1.bf16.msra.mxu1 %v3607_v23  ;;  %v3666_v8 = vld [vmem:[#allocation3 + $0x1e0] ss:$16 sps:$4 sm:$0xff]   ;;  %v3667_v10 = vld [vmem:[#allocation3 + $0x1e8] ss:$16 sps:$4 sm:$0xff]   ;;  %v3670_v11 = vld [vmem:[#allocation3 + $0x204] ss:$16 sps:$4 sm:$0xff]  }
  0x4f   :  { %1683 = vmatprep.subr.bf16.mxu0 %v3608_v24  ;;  %1847 = vmatprep.subr.bf16.mxu1 %v3610_v25  ;;  %v371_v60 = vrot.slane %v349_v58, %v4142_v49  ;;  %v3673_v12 = vld [vmem:[#allocation3 + $0x20c] ss:$16 sps:$4 sm:$0xff]   ;;  %v3668_v14 = vld [vmem:[#allocation3 + $0x200] ss:$16 sps:$4 sm:$0xff]   ;;  %v3671_v17 = vld [vmem:[#allocation3 + $0x208] ss:$16 sps:$4 sm:$0xff]   ;;  %v4154_v20 = vrot.slane %v350_v16, %v4142_v49 }
  0x50   :  { %v3676_v18 = vld [vmem:[#allocation3 + $0x224] ss:$16 sps:$4 sm:$0xff]   ;;  %v3679_v19 = vld [vmem:[#allocation3 + $0x22c] ss:$16 sps:$4 sm:$0xff]   ;;  %v3674_v23 = vld [vmem:[#allocation3 + $0x220] ss:$16 sps:$4 sm:$0xff]  }
  0x51   :  { %1703 = vmatprep.mubr.bf16.mxu0 %v371_v60  ;;  %1867 = vmatprep.mubr.bf16.mxu1 %v371_v60  ;;  %v381_v22 = vcombine.high %v371_v60, %v371_v60  ;;  %v3677_v24 = vld [vmem:[#allocation3 + $0x228] ss:$16 sps:$4 sm:$0xff]   ;;  %v3682_v25 = vld [vmem:[#allocation3 + $0x244] ss:$16 sps:$4 sm:$0xff]   ;;  %v3703_v38 = vld [vmem:[#allocation3 + $0x2ac] ss:$16 sps:$4 sm:$0xff]  }
  0x52   :  { %1684 = vmatpush1.bf16.msra.mxu0 %v3612_v26  ;;  %1848 = vmatpush1.bf16.msra.mxu1 %v3613_v27  ;;  %v3685_v26 = vld [vmem:[#allocation3 + $0x24c] ss:$16 sps:$4 sm:$0xff]   ;;  %v3680_v27 = vld [vmem:[#allocation3 + $0x240] ss:$16 sps:$4 sm:$0xff]   ;;  %v3695_v36 = vld [vmem:[#allocation3 + $0x288] ss:$16 sps:$4 sm:$0xff]  }
  0x53   :  { %1685 = vmatprep.subr.bf16.mxu0 %v3614_v28  ;;  %1849 = vmatprep.subr.bf16.mxu1 %v3616_v29  ;;  %v3683_v28 = vld [vmem:[#allocation3 + $0x248] ss:$16 sps:$4 sm:$0xff]   ;;  %v3688_v29 = vld [vmem:[#allocation3 + $0x264] ss:$16 sps:$4 sm:$0xff]   ;;  %v3709_v42 = vld [vmem:[#allocation3 + $0x2cc] ss:$16 sps:$4 sm:$0xff]  }
  0x54   :  { %v3700_v37 = vld [vmem:[#allocation3 + $0x2a4] ss:$16 sps:$4 sm:$0xff]   ;;  %v3713_v49 = vld [vmem:[#allocation3 + $0x2e8] ss:$16 sps:$4 sm:$0xff]   ;;  %v3716_v52 = vld [vmem:[#allocation3 + $0x300] ss:$16 sps:$4 sm:$0xff]  }
  0x55   :  { %v3724_v54 = vld [vmem:[#allocation3 + $0x324] ss:$16 sps:$4 sm:$0xff]   ;;  %v3728_v60 = vld [vmem:[#allocation3 + $0x340] ss:$16 sps:$4 sm:$0xff]   ;;  %v3749_v9 = vld [vmem:[#allocation3 + $0x3a8] ss:$16 sps:$4 sm:$0xff]  }
  0x56   :  { %1686 = vmatpush1.bf16.msra.mxu0 %v3618_v30  ;;  %1850 = vmatpush1.bf16.msra.mxu1 %v3619_v31  ;;  %v3691_v30 = vld [vmem:[#allocation3 + $0x26c] ss:$16 sps:$4 sm:$0xff]   ;;  %v3686_v31 = vld [vmem:[#allocation3 + $0x260] ss:$16 sps:$4 sm:$0xff]   ;;  %v3730_v58 = vld [vmem:[#allocation3 + $0x344] ss:$16 sps:$4 sm:$0xff]  }
  0x57   :  { %1687 = vmatprep.subr.bf16.mxu0 %v3620_v32  ;;  %1851 = vmatprep.subr.bf16.mxu1 %v3622_v33  ;;  %v3689_v32 = vld [vmem:[#allocation3 + $0x268] ss:$16 sps:$4 sm:$0xff]   ;;  %v3694_v33 = vld [vmem:[#allocation3 + $0x284] ss:$16 sps:$4 sm:$0xff]   ;;  %v3763_v16 = vld [vmem:[#allocation3 + $0x3ec] ss:$16 sps:$4 sm:$0xff]  }
  0x58   :  { %v3755_v13 = vld [vmem:[#allocation3 + $0x3c8] ss:$16 sps:$4 sm:$0xff]   ;;  %s4023_s24 = scalar_lea.vmem %s2872_s23, 32 }
  0x59   :  { %p4024_p10 = scmp.ne.s32.totalorder %s2872_s23, %s4023_s24  ;;  %p4029_p12 = scmp.lt.s32.totalorder %s4023_s24, %s4023_s24 }
  0x5a   :  { %1688 = vmatpush1.bf16.msra.mxu0 %v3624_v34  ;;  %1852 = vmatpush1.bf16.msra.mxu1 %v3625_v35  ;;  %v3697_v34 = vld [vmem:[#allocation3 + $0x28c] ss:$16 sps:$4 sm:$0xff]   ;;  %v3692_v35 = vld [vmem:[#allocation3 + $0x280] ss:$16 sps:$4 sm:$0xff]  }
  0x5b   :  { %1689 = vmatprep.subr.bf16.mxu0 %v3626_v39  ;;  %1853 = vmatprep.subr.bf16.mxu1 %v3628_v40  ;;  %v3698_v39 = vld [vmem:[#allocation3 + $0x2a0] ss:$16 sps:$4 sm:$0xff]   ;;  %v3701_v40 = vld [vmem:[#allocation3 + $0x2a8] ss:$16 sps:$4 sm:$0xff]   ;;  %p4030_p13 = por %p4029_p12, %p4028_p11 }
  0x5d   :  { %p4031_p0 = pnand %p4030_p13, %p4024_p10 }
  0x5e   :  { %1690 = vmatpush1.bf16.msra.mxu0 %v3630_v41  ;;  %1854 = vmatpush1.bf16.msra.mxu1 %v3631_v44  ;;  %v3706_v41 = vld [vmem:[#allocation3 + $0x2c4] ss:$16 sps:$4 sm:$0xff]   ;;  %v3704_v44 = vld [vmem:[#allocation3 + $0x2c0] ss:$16 sps:$4 sm:$0xff]  }
  0x5f   :  { %1691 = vmatprep.subr.bf16.mxu0 %v3632_v45  ;;  %1855 = vmatprep.subr.bf16.mxu1 %v3634_v46  ;;  %v3707_v45 = vld [vmem:[#allocation3 + $0x2c8] ss:$16 sps:$4 sm:$0xff]   ;;  %v3712_v46 = vld [vmem:[#allocation3 + $0x2e4] ss:$16 sps:$4 sm:$0xff]  }
  0x62   :  { %1692 = vmatpush1.bf16.msra.mxu0 %v3636_v47  ;;  %1856 = vmatpush1.bf16.msra.mxu1 %v3637_v48  ;;  %v3715_v47 = vld [vmem:[#allocation3 + $0x2ec] ss:$16 sps:$4 sm:$0xff]   ;;  %v3710_v48 = vld [vmem:[#allocation3 + $0x2e0] ss:$16 sps:$4 sm:$0xff]  }
  0x63   :  { %1693 = vmatprep.subr.bf16.mxu0 %v3638_v50  ;;  %1857 = vmatprep.subr.bf16.mxu1 %v3640_v51  ;;  %v3718_v50 = vld [vmem:[#allocation3 + $0x304] ss:$16 sps:$4 sm:$0xff]   ;;  %v3721_v51 = vld [vmem:[#allocation3 + $0x30c] ss:$16 sps:$4 sm:$0xff]  }
  0x66   :  { %1694 = vmatpush1.bf16.msra.mxu0 %v3642_v53  ;;  %1858 = vmatpush1.bf16.msra.mxu1 %v3643_v55  ;;  %v3719_v53 = vld [vmem:[#allocation3 + $0x308] ss:$16 sps:$4 sm:$0xff]   ;;  %v3727_v55 = vld [vmem:[#allocation3 + $0x32c] ss:$16 sps:$4 sm:$0xff]  }
  0x67   :  { %1695 = vmatprep.subr.bf16.mxu0 %v3644_v56  ;;  %1859 = vmatprep.subr.bf16.mxu1 %v3646_v57  ;;  %v3722_v56 = vld [vmem:[#allocation3 + $0x320] ss:$16 sps:$4 sm:$0xff]   ;;  %v3725_v57 = vld [vmem:[#allocation3 + $0x328] ss:$16 sps:$4 sm:$0xff]  }
  0x6a   :  { %1696 = vmatpush1.bf16.msra.mxu0 %v3648_v59  ;;  %1860 = vmatpush1.bf16.msra.mxu1 %v3649_v61  ;;  %v3733_v59 = vld [vmem:[#allocation3 + $0x34c] ss:$16 sps:$4 sm:$0xff]   ;;  %v3731_v61 = vld [vmem:[#allocation3 + $0x348] ss:$16 sps:$4 sm:$0xff]  }
  0x6b   :  { %1697 = vmatprep.subr.bf16.mxu0 %v3650_v62  ;;  %1861 = vmatprep.subr.bf16.mxu1 %v3652_v63  ;;  %v3736_v62 = vld [vmem:[#allocation3 + $0x364] ss:$16 sps:$4 sm:$0xff]   ;;  %v3739_v63 = vld [vmem:[#allocation3 + $0x36c] ss:$16 sps:$4 sm:$0xff]  }
  0x6e   :  { %1698 = vmatpush1.bf16.msra.mxu0 %v3654_v0  ;;  %1862 = vmatpush1.bf16.msra.mxu1 %v3655_v1  ;;  %v3734_v0 = vld [vmem:[#allocation3 + $0x360] ss:$16 sps:$4 sm:$0xff]   ;;  %v3737_v1 = vld [vmem:[#allocation3 + $0x368] ss:$16 sps:$4 sm:$0xff]  }
  0x6f   :  { %1699 = vmatprep.subr.bf16.mxu0 %v3656_v2  ;;  %1863 = vmatprep.subr.bf16.mxu1 %v3658_v3  ;;  %v3742_v2 = vld [vmem:[#allocation3 + $0x384] ss:$16 sps:$4 sm:$0xff]   ;;  %v3745_v3 = vld [vmem:[#allocation3 + $0x38c] ss:$16 sps:$4 sm:$0xff]  }
  0x72   :  { %1700 = vmatpush1.bf16.msra.mxu0 %v3660_v4  ;;  %1864 = vmatpush1.bf16.msra.mxu1 %v3661_v5  ;;  %v3740_v4 = vld [vmem:[#allocation3 + $0x380] ss:$16 sps:$4 sm:$0xff]   ;;  %v3743_v5 = vld [vmem:[#allocation3 + $0x388] ss:$16 sps:$4 sm:$0xff]  }
  0x73   :  { %1701 = vmatprep.subr.bf16.mxu0 %v3662_v6  ;;  %1865 = vmatprep.subr.bf16.mxu1 %v3664_v7  ;;  %v3748_v6 = vld [vmem:[#allocation3 + $0x3a4] ss:$16 sps:$4 sm:$0xff]   ;;  %v3751_v7 = vld [vmem:[#allocation3 + $0x3ac] ss:$16 sps:$4 sm:$0xff]  }
  0x76   :  { %1702 = vmatpush1.bf16.msra.mxu0 %v3666_v8  ;;  %1866 = vmatpush1.bf16.msra.mxu1 %v3667_v10  ;;  %v3746_v8 = vld [vmem:[#allocation3 + $0x3a0] ss:$16 sps:$4 sm:$0xff]   ;;  %v3754_v10 = vld [vmem:[#allocation3 + $0x3c4] ss:$16 sps:$4 sm:$0xff]  }
  0x77   :  { %1712 = vmatprep.subr.bf16.mxu0 %v3670_v11  ;;  %1876 = vmatprep.subr.bf16.mxu1 %v3673_v12  ;;  %v3757_v11 = vld [vmem:[#allocation3 + $0x3cc] ss:$16 sps:$4 sm:$0xff]   ;;  %v3752_v12 = vld [vmem:[#allocation3 + $0x3c0] ss:$16 sps:$4 sm:$0xff]  }
  0x79   :  { %1704 = vmatmul.mubr.bf16.vlgmr.msra.gmra.mrb[0].mxu0 %v4151_v15  ;;  %1868 = vmatmul.mubr.bf16.vlgmr.msra.gmra.mrb[0].mxu1 %v4151_v15 }
  0x7a   :  { %1713 = vmatpush1.bf16.msra.mxu0 %v3668_v14  ;;  %1877 = vmatpush1.bf16.msra.mxu1 %v3671_v17  ;;  %v3760_v14 = vld [vmem:[#allocation3 + $0x3e4] ss:$16 sps:$4 sm:$0xff]   ;;  %v3758_v17 = vld [vmem:[#allocation3 + $0x3e0] ss:$16 sps:$4 sm:$0xff]  }
  0x7b   :  { %1714 = vmatprep.subr.bf16.mxu0 %v3676_v18  ;;  %1878 = vmatprep.subr.bf16.mxu1 %v3679_v19  ;;  %v3761_v18 = vld [vmem:[#allocation3 + $0x3e8] ss:$16 sps:$4 sm:$0xff]   ;;  %v3766_v19 = vld [vmem:[#allocation3 + $0x404] ss:$16 sps:$4 sm:$0xff]  }
  0x7c   :  { %1744 = vmatprep.mubr.bf16.mxu0 %v381_v22  ;;  %1908 = vmatprep.mubr.bf16.mxu1 %v381_v22  ;;  %v3769_v22 = vld [vmem:[#allocation3 + $0x40c] ss:$16 sps:$4 sm:$0xff]  }
  0x7e   :  { %1715 = vmatpush1.bf16.msra.mxu0 %v3674_v23  ;;  %1879 = vmatpush1.bf16.msra.mxu1 %v3677_v24  ;;  %v3764_v23 = vld [vmem:[#allocation3 + $0x400] ss:$16 sps:$4 sm:$0xff]   ;;  %v379_v24 = vcombine.high %v4151_v15, %v4151_v15 }
  0x7f   :  { %1716 = vmatprep.subr.bf16.mxu0 %v3682_v25  ;;  %1880 = vmatprep.subr.bf16.mxu1 %v3685_v26  ;;  %v3767_v25 = vld [vmem:[#allocation3 + $0x408] ss:$16 sps:$4 sm:$0xff]   ;;  %v3772_v26 = vld [vmem:[#allocation3 + $0x424] ss:$16 sps:$4 sm:$0xff]   ;;  %v3776_v15 = vld [vmem:[#allocation3 + $0x440] ss:$16 sps:$4 sm:$0xff]  }
  0x82   :  { %1717 = vmatpush1.bf16.msra.mxu0 %v3680_v27  ;;  %1881 = vmatpush1.bf16.msra.mxu1 %v3683_v28  ;;  %v3775_v27 = vld [vmem:[#allocation3 + $0x42c] ss:$16 sps:$4 sm:$0xff]   ;;  %v3770_v28 = vld [vmem:[#allocation3 + $0x420] ss:$16 sps:$4 sm:$0xff]  }
  0x83   :  { %1718 = vmatprep.subr.bf16.mxu0 %v3688_v29  ;;  %1882 = vmatprep.subr.bf16.mxu1 %v3691_v30  ;;  %v3773_v29 = vld [vmem:[#allocation3 + $0x428] ss:$16 sps:$4 sm:$0xff]   ;;  %v3778_v30 = vld [vmem:[#allocation3 + $0x444] ss:$16 sps:$4 sm:$0xff]  }
  0x86   :  { %1719 = vmatpush1.bf16.msra.mxu0 %v3686_v31  ;;  %1883 = vmatpush1.bf16.msra.mxu1 %v3689_v32  ;;  %v3781_v31 = vld [vmem:[#allocation3 + $0x44c] ss:$16 sps:$4 sm:$0xff]   ;;  %v3779_v32 = vld [vmem:[#allocation3 + $0x448] ss:$16 sps:$4 sm:$0xff]  }
  0x87   :  { %1720 = vmatprep.subr.bf16.mxu0 %v3694_v33  ;;  %1884 = vmatprep.subr.bf16.mxu1 %v3697_v34  ;;  %v3784_v33 = vld [vmem:[#allocation3 + $0x464] ss:$16 sps:$4 sm:$0xff]   ;;  %v3787_v34 = vld [vmem:[#allocation3 + $0x46c] ss:$16 sps:$4 sm:$0xff]  }
  0x8a   :  { %1721 = vmatpush1.bf16.msra.mxu0 %v3692_v35  ;;  %1885 = vmatpush1.bf16.msra.mxu1 %v3695_v36  ;;  %v3782_v35 = vld [vmem:[#allocation3 + $0x460] ss:$16 sps:$4 sm:$0xff]   ;;  %v3785_v36 = vld [vmem:[#allocation3 + $0x468] ss:$16 sps:$4 sm:$0xff]  }
  0x8b   :  { %1722 = vmatprep.subr.bf16.mxu0 %v3700_v37  ;;  %1886 = vmatprep.subr.bf16.mxu1 %v3703_v38  ;;  %v3790_v37 = vld [vmem:[#allocation3 + $0x484] ss:$16 sps:$4 sm:$0xff]   ;;  %v3793_v38 = vld [vmem:[#allocation3 + $0x48c] ss:$16 sps:$4 sm:$0xff]  }
  0x8e   :  { %1723 = vmatpush1.bf16.msra.mxu0 %v3698_v39  ;;  %1887 = vmatpush1.bf16.msra.mxu1 %v3701_v40  ;;  %v3788_v39 = vld [vmem:[#allocation3 + $0x480] ss:$16 sps:$4 sm:$0xff]   ;;  %v3791_v40 = vld [vmem:[#allocation3 + $0x488] ss:$16 sps:$4 sm:$0xff]  }
  0x8f   :  { %1724 = vmatprep.subr.bf16.mxu0 %v3706_v41  ;;  %1888 = vmatprep.subr.bf16.mxu1 %v3709_v42  ;;  %v3796_v41 = vld [vmem:[#allocation3 + $0x4a4] ss:$16 sps:$4 sm:$0xff]   ;;  %v3799_v42 = vld [vmem:[#allocation3 + $0x4ac] ss:$16 sps:$4 sm:$0xff]  }
  0x92   :  { %1725 = vmatpush1.bf16.msra.mxu0 %v3704_v44  ;;  %1889 = vmatpush1.bf16.msra.mxu1 %v3707_v45  ;;  %v3794_v44 = vld [vmem:[#allocation3 + $0x4a0] ss:$16 sps:$4 sm:$0xff]   ;;  %v3797_v45 = vld [vmem:[#allocation3 + $0x4a8] ss:$16 sps:$4 sm:$0xff]  }
  0x93   :  { %1726 = vmatprep.subr.bf16.mxu0 %v3712_v46  ;;  %1890 = vmatprep.subr.bf16.mxu1 %v3715_v47  ;;  %v3802_v46 = vld [vmem:[#allocation3 + $0x4c4] ss:$16 sps:$4 sm:$0xff]   ;;  %v3805_v47 = vld [vmem:[#allocation3 + $0x4cc] ss:$16 sps:$4 sm:$0xff]  }
  0x96   :  { %1727 = vmatpush1.bf16.msra.mxu0 %v3710_v48  ;;  %1891 = vmatpush1.bf16.msra.mxu1 %v3713_v49  ;;  %v3800_v48 = vld [vmem:[#allocation3 + $0x4c0] ss:$16 sps:$4 sm:$0xff]   ;;  %v3803_v49 = vld [vmem:[#allocation3 + $0x4c8] ss:$16 sps:$4 sm:$0xff]  }
  0x97   :  { %1728 = vmatprep.subr.bf16.mxu0 %v3718_v50  ;;  %1892 = vmatprep.subr.bf16.mxu1 %v3721_v51  ;;  %v3808_v50 = vld [vmem:[#allocation3 + $0x4e4] ss:$16 sps:$4 sm:$0xff]   ;;  %v3811_v51 = vld [vmem:[#allocation3 + $0x4ec] ss:$16 sps:$4 sm:$0xff]  }
  0x9a   :  { %1729 = vmatpush1.bf16.msra.mxu0 %v3716_v52  ;;  %1893 = vmatpush1.bf16.msra.mxu1 %v3719_v53  ;;  %v3806_v52 = vld [vmem:[#allocation3 + $0x4e0] ss:$16 sps:$4 sm:$0xff]   ;;  %v3809_v53 = vld [vmem:[#allocation3 + $0x4e8] ss:$16 sps:$4 sm:$0xff]  }
  0x9b   :  { %1730 = vmatprep.subr.bf16.mxu0 %v3724_v54  ;;  %1894 = vmatprep.subr.bf16.mxu1 %v3727_v55  ;;  %v3814_v54 = vld [vmem:[#allocation3 + $0x504] ss:$16 sps:$4 sm:$0xff]   ;;  %v3817_v55 = vld [vmem:[#allocation3 + $0x50c] ss:$16 sps:$4 sm:$0xff]  }
  0x9e   :  { %1731 = vmatpush1.bf16.msra.mxu0 %v3722_v56  ;;  %1895 = vmatpush1.bf16.msra.mxu1 %v3725_v57  ;;  %v3812_v56 = vld [vmem:[#allocation3 + $0x500] ss:$16 sps:$4 sm:$0xff]   ;;  %v3815_v57 = vld [vmem:[#allocation3 + $0x508] ss:$16 sps:$4 sm:$0xff]  }
  0x9f   :  { %1732 = vmatprep.subr.bf16.mxu0 %v3730_v58  ;;  %1896 = vmatprep.subr.bf16.mxu1 %v3733_v59  ;;  %v3820_v58 = vld [vmem:[#allocation3 + $0x524] ss:$16 sps:$4 sm:$0xff]   ;;  %v3823_v59 = vld [vmem:[#allocation3 + $0x52c] ss:$16 sps:$4 sm:$0xff]  }
  0xa2   :  { %1733 = vmatpush1.bf16.msra.mxu0 %v3728_v60  ;;  %1897 = vmatpush1.bf16.msra.mxu1 %v3731_v61  ;;  %v3818_v60 = vld [vmem:[#allocation3 + $0x520] ss:$16 sps:$4 sm:$0xff]   ;;  %v3821_v61 = vld [vmem:[#allocation3 + $0x528] ss:$16 sps:$4 sm:$0xff]  }
  0xa3   :  { %1734 = vmatprep.subr.bf16.mxu0 %v3736_v62  ;;  %1898 = vmatprep.subr.bf16.mxu1 %v3739_v63  ;;  %v3826_v62 = vld [vmem:[#allocation3 + $0x544] ss:$16 sps:$4 sm:$0xff]   ;;  %v3829_v63 = vld [vmem:[#allocation3 + $0x54c] ss:$16 sps:$4 sm:$0xff]  }
  0xa6   :  { %1735 = vmatpush1.bf16.msra.mxu0 %v3734_v0  ;;  %1899 = vmatpush1.bf16.msra.mxu1 %v3737_v1  ;;  %v3824_v0 = vld [vmem:[#allocation3 + $0x540] ss:$16 sps:$4 sm:$0xff]   ;;  %v3827_v1 = vld [vmem:[#allocation3 + $0x548] ss:$16 sps:$4 sm:$0xff]  }
  0xa7   :  { %1736 = vmatprep.subr.bf16.mxu0 %v3742_v2  ;;  %1900 = vmatprep.subr.bf16.mxu1 %v3745_v3  ;;  %v3832_v2 = vld [vmem:[#allocation3 + $0x564] ss:$16 sps:$4 sm:$0xff]   ;;  %v3835_v3 = vld [vmem:[#allocation3 + $0x56c] ss:$16 sps:$4 sm:$0xff]  }
  0xaa   :  { %1737 = vmatpush1.bf16.msra.mxu0 %v3740_v4  ;;  %1901 = vmatpush1.bf16.msra.mxu1 %v3743_v5  ;;  %v3830_v4 = vld [vmem:[#allocation3 + $0x560] ss:$16 sps:$4 sm:$0xff]   ;;  %v3833_v5 = vld [vmem:[#allocation3 + $0x568] ss:$16 sps:$4 sm:$0xff]  }
  0xab   :  { %1738 = vmatprep.subr.bf16.mxu0 %v3748_v6  ;;  %1902 = vmatprep.subr.bf16.mxu1 %v3751_v7  ;;  %v3838_v6 = vld [vmem:[#allocation3 + $0x584] ss:$16 sps:$4 sm:$0xff]   ;;  %v3841_v7 = vld [vmem:[#allocation3 + $0x58c] ss:$16 sps:$4 sm:$0xff]  }
  0xae   :  { %1739 = vmatpush1.bf16.msra.mxu0 %v3746_v8  ;;  %1903 = vmatpush1.bf16.msra.mxu1 %v3749_v9  ;;  %v3836_v8 = vld [vmem:[#allocation3 + $0x580] ss:$16 sps:$4 sm:$0xff]   ;;  %v3839_v9 = vld [vmem:[#allocation3 + $0x588] ss:$16 sps:$4 sm:$0xff]  }
  0xaf   :  { %1740 = vmatprep.subr.bf16.mxu0 %v3754_v10  ;;  %1904 = vmatprep.subr.bf16.mxu1 %v3757_v11  ;;  %v3844_v10 = vld [vmem:[#allocation3 + $0x5a4] ss:$16 sps:$4 sm:$0xff]   ;;  %v3847_v11 = vld [vmem:[#allocation3 + $0x5ac] ss:$16 sps:$4 sm:$0xff]  }
  0xb2   :  { %1741 = vmatpush1.bf16.msra.mxu0 %v3752_v12  ;;  %1905 = vmatpush1.bf16.msra.mxu1 %v3755_v13  ;;  %v3842_v12 = vld [vmem:[#allocation3 + $0x5a0] ss:$16 sps:$4 sm:$0xff]   ;;  %v3845_v13 = vld [vmem:[#allocation3 + $0x5a8] ss:$16 sps:$4 sm:$0xff]  }
  0xb3   :  { %1742 = vmatprep.subr.bf16.mxu0 %v3760_v14  ;;  %1906 = vmatprep.subr.bf16.mxu1 %v3763_v16  ;;  %v3850_v14 = vld [vmem:[#allocation3 + $0x5c4] ss:$16 sps:$4 sm:$0xff]   ;;  %v3853_v16 = vld [vmem:[#allocation3 + $0x5cc] ss:$16 sps:$4 sm:$0xff]  }
  0xb6   :  { %1743 = vmatpush1.bf16.msra.mxu0 %v3758_v17  ;;  %1907 = vmatpush1.bf16.msra.mxu1 %v3761_v18  ;;  %v3848_v17 = vld [vmem:[#allocation3 + $0x5c0] ss:$16 sps:$4 sm:$0xff]   ;;  %v3851_v18 = vld [vmem:[#allocation3 + $0x5c8] ss:$16 sps:$4 sm:$0xff]  }
  0xb7   :  { %1753 = vmatprep.subr.bf16.mxu0 %v3766_v19  ;;  %1917 = vmatprep.subr.bf16.mxu1 %v3769_v22  ;;  %v3856_v19 = vld [vmem:[#allocation3 + $0x5e4] ss:$16 sps:$4 sm:$0xff]   ;;  %v3859_v22 = vld [vmem:[#allocation3 + $0x5ec] ss:$16 sps:$4 sm:$0xff]  }
  0xb9   :  { %1745 = vmatmul.mubr.bf16.vlgmr.msra.gmra.mrb[0].mxu0 %v379_v24  ;;  %1909 = vmatmul.mubr.bf16.vlgmr.msra.gmra.mrb[0].mxu1 %v379_v24  ;;  %v3857_v24 = vld [vmem:[#allocation3 + $0x5e8] ss:$16 sps:$4 sm:$0xff]  }
  0xba   :  { %1754 = vmatpush1.bf16.msra.mxu0 %v3764_v23  ;;  %1918 = vmatpush1.bf16.msra.mxu1 %v3767_v25  ;;  %v3854_v23 = vld [vmem:[#allocation3 + $0x5e0] ss:$16 sps:$4 sm:$0xff]   ;;  %v3863_v25 = vld [vmem:[#allocation3 + $0x604] ss:$16 sps:$4 sm:$0xff]  }
  0xbb   :  { %1755 = vmatprep.subr.bf16.mxu0 %v3772_v26  ;;  %1919 = vmatprep.subr.bf16.mxu1 %v3775_v27  ;;  %v3866_v26 = vld [vmem:[#allocation3 + $0x60c] ss:$16 sps:$4 sm:$0xff]   ;;  %v3861_v27 = vld [vmem:[#allocation3 + $0x600] ss:$16 sps:$4 sm:$0xff]  }
  0xbc   :  { %1785 = vmatprep.mubr.bf16.mxu0 %v4154_v20  ;;  %1949 = vmatprep.mubr.bf16.mxu1 %v4154_v20 }
  0xbe   :  { %1756 = vmatpush1.bf16.msra.mxu0 %v3770_v28  ;;  %1920 = vmatpush1.bf16.msra.mxu1 %v3773_v29  ;;  %v3864_v28 = vld [vmem:[#allocation3 + $0x608] ss:$16 sps:$4 sm:$0xff]   ;;  %v3869_v29 = vld [vmem:[#allocation3 + $0x624] ss:$16 sps:$4 sm:$0xff]  }
  0xbf   :  { %1757 = vmatprep.subr.bf16.mxu0 %v3778_v30  ;;  %1921 = vmatprep.subr.bf16.mxu1 %v3781_v31  ;;  %v3872_v30 = vld [vmem:[#allocation3 + $0x62c] ss:$16 sps:$4 sm:$0xff]   ;;  %v382_v31 = vcombine.high %v4154_v20, %v4154_v20  ;;  %v3881_v20 = vld [vmem:[#allocation3 + $0x664] ss:$16 sps:$4 sm:$0xff]  }
  0xc2   :  { %1758 = vmatpush1.bf16.msra.mxu0 %v3776_v15  ;;  %1922 = vmatpush1.bf16.msra.mxu1 %v3779_v32  ;;  %v3867_v15 = vld [vmem:[#allocation3 + $0x620] ss:$16 sps:$4 sm:$0xff]   ;;  %v3870_v32 = vld [vmem:[#allocation3 + $0x628] ss:$16 sps:$4 sm:$0xff]  }
  0xc3   :  { %1759 = vmatprep.subr.bf16.mxu0 %v3784_v33  ;;  %1923 = vmatprep.subr.bf16.mxu1 %v3787_v34  ;;  %v3875_v33 = vld [vmem:[#allocation3 + $0x644] ss:$16 sps:$4 sm:$0xff]   ;;  %v3878_v34 = vld [vmem:[#allocation3 + $0x64c] ss:$16 sps:$4 sm:$0xff]  }
  0xc6   :  { %1760 = vmatpush1.bf16.msra.mxu0 %v3782_v35  ;;  %1924 = vmatpush1.bf16.msra.mxu1 %v3785_v36  ;;  %v3873_v35 = vld [vmem:[#allocation3 + $0x640] ss:$16 sps:$4 sm:$0xff]   ;;  %v3876_v36 = vld [vmem:[#allocation3 + $0x648] ss:$16 sps:$4 sm:$0xff]  }
  0xc7   :  { %1761 = vmatprep.subr.bf16.mxu0 %v3790_v37  ;;  %1925 = vmatprep.subr.bf16.mxu1 %v3793_v38  ;;  %v3884_v37 = vld [vmem:[#allocation3 + $0x66c] ss:$16 sps:$4 sm:$0xff]   ;;  %v3879_v38 = vld [vmem:[#allocation3 + $0x660] ss:$16 sps:$4 sm:$0xff]  }
  0xca   :  { %1762 = vmatpush1.bf16.msra.mxu0 %v3788_v39  ;;  %1926 = vmatpush1.bf16.msra.mxu1 %v3791_v40  ;;  %v3882_v39 = vld [vmem:[#allocation3 + $0x668] ss:$16 sps:$4 sm:$0xff]   ;;  %v3887_v40 = vld [vmem:[#allocation3 + $0x684] ss:$16 sps:$4 sm:$0xff]  }
  0xcb   :  { %1763 = vmatprep.subr.bf16.mxu0 %v3796_v41  ;;  %1927 = vmatprep.subr.bf16.mxu1 %v3799_v42  ;;  %v3890_v41 = vld [vmem:[#allocation3 + $0x68c] ss:$16 sps:$4 sm:$0xff]   ;;  %v3885_v42 = vld [vmem:[#allocation3 + $0x680] ss:$16 sps:$4 sm:$0xff]  }
  0xce   :  { %1764 = vmatpush1.bf16.msra.mxu0 %v3794_v44  ;;  %1928 = vmatpush1.bf16.msra.mxu1 %v3797_v45  ;;  %v3888_v44 = vld [vmem:[#allocation3 + $0x688] ss:$16 sps:$4 sm:$0xff]   ;;  %v3893_v45 = vld [vmem:[#allocation3 + $0x6a4] ss:$16 sps:$4 sm:$0xff]  }
  0xcf   :  { %1765 = vmatprep.subr.bf16.mxu0 %v3802_v46  ;;  %1929 = vmatprep.subr.bf16.mxu1 %v3805_v47  ;;  %v3896_v46 = vld [vmem:[#allocation3 + $0x6ac] ss:$16 sps:$4 sm:$0xff]   ;;  %v3891_v47 = vld [vmem:[#allocation3 + $0x6a0] ss:$16 sps:$4 sm:$0xff]  }
  0xd2   :  { %1766 = vmatpush1.bf16.msra.mxu0 %v3800_v48  ;;  %1930 = vmatpush1.bf16.msra.mxu1 %v3803_v49  ;;  %v3894_v48 = vld [vmem:[#allocation3 + $0x6a8] ss:$16 sps:$4 sm:$0xff]   ;;  %v3899_v49 = vld [vmem:[#allocation3 + $0x6c4] ss:$16 sps:$4 sm:$0xff]  }
  0xd3   :  { %1767 = vmatprep.subr.bf16.mxu0 %v3808_v50  ;;  %1931 = vmatprep.subr.bf16.mxu1 %v3811_v51  ;;  %v3902_v50 = vld [vmem:[#allocation3 + $0x6cc] ss:$16 sps:$4 sm:$0xff]   ;;  %v3897_v51 = vld [vmem:[#allocation3 + $0x6c0] ss:$16 sps:$4 sm:$0xff]  }
  0xd6   :  { %1768 = vmatpush1.bf16.msra.mxu0 %v3806_v52  ;;  %1932 = vmatpush1.bf16.msra.mxu1 %v3809_v53  ;;  %v3900_v52 = vld [vmem:[#allocation3 + $0x6c8] ss:$16 sps:$4 sm:$0xff]   ;;  %v3905_v53 = vld [vmem:[#allocation3 + $0x6e4] ss:$16 sps:$4 sm:$0xff]  }
  0xd7   :  { %1769 = vmatprep.subr.bf16.mxu0 %v3814_v54  ;;  %1933 = vmatprep.subr.bf16.mxu1 %v3817_v55  ;;  %v3908_v54 = vld [vmem:[#allocation3 + $0x6ec] ss:$16 sps:$4 sm:$0xff]   ;;  %v3903_v55 = vld [vmem:[#allocation3 + $0x6e0] ss:$16 sps:$4 sm:$0xff]  }
  0xda   :  { %1770 = vmatpush1.bf16.msra.mxu0 %v3812_v56  ;;  %1934 = vmatpush1.bf16.msra.mxu1 %v3815_v57  ;;  %v3906_v56 = vld [vmem:[#allocation3 + $0x6e8] ss:$16 sps:$4 sm:$0xff]   ;;  %v3911_v57 = vld [vmem:[#allocation3 + $0x704] ss:$16 sps:$4 sm:$0xff]  }
  0xdb   :  { %1771 = vmatprep.subr.bf16.mxu0 %v3820_v58  ;;  %1935 = vmatprep.subr.bf16.mxu1 %v3823_v59  ;;  %v3914_v58 = vld [vmem:[#allocation3 + $0x70c] ss:$16 sps:$4 sm:$0xff]   ;;  %v3909_v59 = vld [vmem:[#allocation3 + $0x700] ss:$16 sps:$4 sm:$0xff]  }
  0xde   :  { %1772 = vmatpush1.bf16.msra.mxu0 %v3818_v60  ;;  %1936 = vmatpush1.bf16.msra.mxu1 %v3821_v61  ;;  %v3912_v60 = vld [vmem:[#allocation3 + $0x708] ss:$16 sps:$4 sm:$0xff]   ;;  %v3917_v61 = vld [vmem:[#allocation3 + $0x724] ss:$16 sps:$4 sm:$0xff]  }
  0xdf   :  { %1773 = vmatprep.subr.bf16.mxu0 %v3826_v62  ;;  %1937 = vmatprep.subr.bf16.mxu1 %v3829_v63  ;;  %v3920_v62 = vld [vmem:[#allocation3 + $0x72c] ss:$16 sps:$4 sm:$0xff]   ;;  %v3915_v63 = vld [vmem:[#allocation3 + $0x720] ss:$16 sps:$4 sm:$0xff]  }
  0xe2   :  { %1774 = vmatpush1.bf16.msra.mxu0 %v3824_v0  ;;  %1938 = vmatpush1.bf16.msra.mxu1 %v3827_v1  ;;  %v3918_v0 = vld [vmem:[#allocation3 + $0x728] ss:$16 sps:$4 sm:$0xff]   ;;  %v3923_v1 = vld [vmem:[#allocation3 + $0x744] ss:$16 sps:$4 sm:$0xff]  }
  0xe3   :  { %1775 = vmatprep.subr.bf16.mxu0 %v3832_v2  ;;  %1939 = vmatprep.subr.bf16.mxu1 %v3835_v3  ;;  %v3926_v2 = vld [vmem:[#allocation3 + $0x74c] ss:$16 sps:$4 sm:$0xff]   ;;  %v3921_v3 = vld [vmem:[#allocation3 + $0x740] ss:$16 sps:$4 sm:$0xff]  }
  0xe6   :  { %1776 = vmatpush1.bf16.msra.mxu0 %v3830_v4  ;;  %1940 = vmatpush1.bf16.msra.mxu1 %v3833_v5  ;;  %v3924_v4 = vld [vmem:[#allocation3 + $0x748] ss:$16 sps:$4 sm:$0xff]   ;;  %v3929_v5 = vld [vmem:[#allocation3 + $0x764] ss:$16 sps:$4 sm:$0xff]  }
  0xe7   :  { %1777 = vmatprep.subr.bf16.mxu0 %v3838_v6  ;;  %1941 = vmatprep.subr.bf16.mxu1 %v3841_v7  ;;  %v3932_v6 = vld [vmem:[#allocation3 + $0x76c] ss:$16 sps:$4 sm:$0xff]   ;;  %v3927_v7 = vld [vmem:[#allocation3 + $0x760] ss:$16 sps:$4 sm:$0xff]  }
  0xea   :  { %1778 = vmatpush1.bf16.msra.mxu0 %v3836_v8  ;;  %1942 = vmatpush1.bf16.msra.mxu1 %v3839_v9  ;;  %v3930_v8 = vld [vmem:[#allocation3 + $0x768] ss:$16 sps:$4 sm:$0xff]   ;;  %v3935_v9 = vld [vmem:[#allocation3 + $0x784] ss:$16 sps:$4 sm:$0xff]  }
  0xeb   :  { %1779 = vmatprep.subr.bf16.mxu0 %v3844_v10  ;;  %1943 = vmatprep.subr.bf16.mxu1 %v3847_v11  ;;  %v3938_v10 = vld [vmem:[#allocation3 + $0x78c] ss:$16 sps:$4 sm:$0xff]   ;;  %v3933_v11 = vld [vmem:[#allocation3 + $0x780] ss:$16 sps:$4 sm:$0xff]  }
  0xee   :  { %1780 = vmatpush1.bf16.msra.mxu0 %v3842_v12  ;;  %1944 = vmatpush1.bf16.msra.mxu1 %v3845_v13  ;;  %v3936_v12 = vld [vmem:[#allocation3 + $0x788] ss:$16 sps:$4 sm:$0xff]   ;;  %v3941_v13 = vld [vmem:[#allocation3 + $0x7a4] ss:$16 sps:$4 sm:$0xff]  }
  0xef   :  { %1781 = vmatprep.subr.bf16.mxu0 %v3850_v14  ;;  %1945 = vmatprep.subr.bf16.mxu1 %v3853_v16  ;;  %v3944_v14 = vld [vmem:[#allocation3 + $0x7ac] ss:$16 sps:$4 sm:$0xff]   ;;  %v3939_v16 = vld [vmem:[#allocation3 + $0x7a0] ss:$16 sps:$4 sm:$0xff]  }
  0xf2   :  { %1782 = vmatpush1.bf16.msra.mxu0 %v3848_v17  ;;  %1946 = vmatpush1.bf16.msra.mxu1 %v3851_v18  ;;  %v3942_v17 = vld [vmem:[#allocation3 + $0x7a8] ss:$16 sps:$4 sm:$0xff]   ;;  %v3947_v18 = vld [vmem:[#allocation3 + $0x7c4] ss:$16 sps:$4 sm:$0xff]  }
  0xf3   :  { %1783 = vmatprep.subr.bf16.mxu0 %v3856_v19  ;;  %1947 = vmatprep.subr.bf16.mxu1 %v3859_v22  ;;  %v3950_v19 = vld [vmem:[#allocation3 + $0x7cc] ss:$16 sps:$4 sm:$0xff]   ;;  %v3945_v22 = vld [vmem:[#allocation3 + $0x7c0] ss:$16 sps:$4 sm:$0xff]  }
  0xf6   :  { %1784 = vmatpush1.bf16.msra.mxu0 %v3854_v23  ;;  %1948 = vmatpush1.bf16.msra.mxu1 %v3857_v24  ;;  %v3948_v23 = vld [vmem:[#allocation3 + $0x7c8] ss:$16 sps:$4 sm:$0xff]   ;;  %v3953_v24 = vld [vmem:[#allocation3 + $0x7e4] ss:$16 sps:$4 sm:$0xff]  }
  0xf7   :  { %1794 = vmatprep.subr.bf16.mxu0 %v3863_v25  ;;  %1958 = vmatprep.subr.bf16.mxu1 %v3866_v26  ;;  %v3956_v25 = vld [vmem:[#allocation3 + $0x7ec] ss:$16 sps:$4 sm:$0xff]  }
  0xf8   :  { %v2066_v26 = vld [vmem:[#allocation6 + $0x8] sm:$0xff] }
  0xf9   :  { %1786 = vmatmul.mubr.bf16.vlgmr.msra.gmra.mrb[0].mxu0 %v4157_v21  ;;  %1950 = vmatmul.mubr.bf16.vlgmr.msra.gmra.mrb[0].mxu1 %v4157_v21 }
  0xfa   :  { %1795 = vmatpush1.bf16.msra.mxu0 %v3861_v27  ;;  %1959 = vmatpush1.bf16.msra.mxu1 %v3864_v28  ;;  %v2070_v27 = vld [vmem:[#allocation6 + $0x28] sm:$0xff]  ;;  %v2068_v28 = vld [vmem:[#allocation6 + $0x18] sm:$0xff] }
  0xfb   :  { %1796 = vmatprep.subr.bf16.mxu0 %v3869_v29  ;;  %1960 = vmatprep.subr.bf16.mxu1 %v3872_v30  ;;  %v2072_v29 = vld [vmem:[#allocation6 + $0x38] sm:$0xff]  ;;  %v3951_v30 = vld [vmem:[#allocation3 + $0x7e0] ss:$16 sps:$4 sm:$0xff]  }
  0xfc   :  { %1826 = vmatprep.mubr.bf16.mxu0 %v382_v31  ;;  %1990 = vmatprep.mubr.bf16.mxu1 %v382_v31  ;;  %v3954_v31 = vld [vmem:[#allocation3 + $0x7e8] ss:$16 sps:$4 sm:$0xff]  }
  0xfe   :  { %1797 = vmatpush1.bf16.msra.mxu0 %v3867_v15  ;;  %1961 = vmatpush1.bf16.msra.mxu1 %v3870_v32  ;;  %v2065_v15 = vld [vmem:[#allocation6] sm:$0xff] }
  0xff   :  { %1798 = vmatprep.subr.bf16.mxu0 %v3875_v33  ;;  %1962 = vmatprep.subr.bf16.mxu1 %v3878_v34  ;;  %v2069_v32 = vld [vmem:[#allocation6 + $0x20] sm:$0xff]  ;;  %v3208_v33 = vpack.c.bf16 %v2070_v27, %v2066_v26  ;;  %v3336_v34 = vpack.c.bf16 %v2072_v29, %v2068_v28  ;;  %v2108_v26 = vld [vmem:[#allocation6 + $0x158] sm:$0xff] }
 0x100   :  { %v2112_v27 = vld [vmem:[#allocation6 + $0x178] sm:$0xff] }
 0x102   :  { %1799 = vmatpush1.bf16.msra.mxu0 %v3873_v35  ;;  %1963 = vmatpush1.bf16.msra.mxu1 %v3876_v36  ;;  %v2067_v35 = vld [vmem:[#allocation6 + $0x10] sm:$0xff] }
 0x103   :  { %1800 = vmatprep.subr.bf16.mxu0 %v3881_v20  ;;  %1964 = vmatprep.subr.bf16.mxu1 %v3884_v37  ;;  %v2071_v36 = vld [vmem:[#allocation6 + $0x30] sm:$0xff]  ;;  %v2074_v20 = vld [vmem:[#allocation6 + $0x48] sm:$0xff] }
 0x104   :  { %v2078_v37 = vld [vmem:[#allocation6 + $0x68] sm:$0xff] }
 0x106   :  { %1801 = vmatpush1.bf16.msra.mxu0 %v3879_v38  ;;  %1965 = vmatpush1.bf16.msra.mxu1 %v3882_v39  ;;  %v2076_v38 = vld [vmem:[#allocation6 + $0x58] sm:$0xff] }
 0x107   :  { %1802 = vmatprep.subr.bf16.mxu0 %v3887_v40  ;;  %1966 = vmatprep.subr.bf16.mxu1 %v3890_v41  ;;  %v2080_v39 = vld [vmem:[#allocation6 + $0x78] sm:$0xff]  ;;  %v380_v40 = vcombine.high %v4157_v21, %v4157_v21  ;;  %v3210_v41 = vpack.c.bf16 %v2069_v32, %v2065_v15  ;;  %v3356_v32 = vpack.c.bf16 %v2112_v27, %v2108_v26  ;;  %v2145_v27 = vld [vmem:[#allocation6 + $0x280] sm:$0xff] }
 0x10a   :  { %1803 = vmatpush1.bf16.msra.mxu0 %v3885_v42  ;;  %1967 = vmatpush1.bf16.msra.mxu1 %v3888_v44  ;;  %v3338_v42 = vpack.c.bf16 %v2071_v36, %v2067_v35  ;;  %v2073_v44 = vld [vmem:[#allocation6 + $0x40] sm:$0xff]  ;;  %v2114_v35 = vld [vmem:[#allocation6 + $0x188] sm:$0xff] }
 0x10b   :  { %1804 = vmatprep.subr.bf16.mxu0 %v3893_v45  ;;  %1968 = vmatprep.subr.bf16.mxu1 %v3896_v46  ;;  %v2077_v45 = vld [vmem:[#allocation6 + $0x60] sm:$0xff]  ;;  %v3212_v46 = vpack.c.bf16 %v2078_v37, %v2074_v20  ;;  %v2118_v36 = vld [vmem:[#allocation6 + $0x1a8] sm:$0xff]  ;;  %v2116_v20 = vld [vmem:[#allocation6 + $0x198] sm:$0xff] }
 0x10c   :  { %v3214_v21 = vpack.c.bf16 %v2077_v45, %v2073_v44  ;;  %v2120_v37 = vld [vmem:[#allocation6 + $0x1b8] sm:$0xff]  ;;  %v2115_v45 = vld [vmem:[#allocation6 + $0x190] sm:$0xff] }
 0x10d   :  { %v3360_v44 = vpack.c.bf16 %v2120_v37, %v2116_v20  ;;  %v2153_v37 = vld [vmem:[#allocation6 + $0x2c0] sm:$0xff] }
 0x10e   :  { %1805 = vmatpush1.bf16.msra.mxu0 %v3891_v47  ;;  %1969 = vmatpush1.bf16.msra.mxu1 %v3894_v48  ;;  %v3340_v47 = vpack.c.bf16 %v2080_v39, %v2076_v38  ;;  %v2075_v48 = vld [vmem:[#allocation6 + $0x50] sm:$0xff] }
 0x10f   :  { %1806 = vmatprep.subr.bf16.mxu0 %v3899_v49  ;;  %1970 = vmatprep.subr.bf16.mxu1 %v3902_v50  ;;  %v2079_v49 = vld [vmem:[#allocation6 + $0x70] sm:$0xff]  ;;  %v2082_v50 = vld [vmem:[#allocation6 + $0x88] sm:$0xff] }
 0x112   :  { %1807 = vmatpush1.bf16.msra.mxu0 %v3897_v51  ;;  %1971 = vmatpush1.bf16.msra.mxu1 %v3900_v52  ;;  %v2086_v51 = vld [vmem:[#allocation6 + $0xa8] sm:$0xff]  ;;  %v2084_v52 = vld [vmem:[#allocation6 + $0x98] sm:$0xff] }
 0x113   :  { %1808 = vmatprep.subr.bf16.mxu0 %v3905_v53  ;;  %1972 = vmatprep.subr.bf16.mxu1 %v3908_v54  ;;  %v2088_v53 = vld [vmem:[#allocation6 + $0xb8] sm:$0xff]  ;;  %v3342_v54 = vpack.c.bf16 %v2079_v49, %v2075_v48  ;;  %v2126_v48 = vld [vmem:[#allocation6 + $0x1e8] sm:$0xff] }
 0x114   :  { %v2124_v49 = vld [vmem:[#allocation6 + $0x1d8] sm:$0xff] }
 0x116   :  { %1809 = vmatpush1.bf16.msra.mxu0 %v3903_v55  ;;  %1973 = vmatpush1.bf16.msra.mxu1 %v3906_v56  ;;  %v2081_v55 = vld [vmem:[#allocation6 + $0x80] sm:$0xff] }
 0x117   :  { %1810 = vmatprep.subr.bf16.mxu0 %v3911_v57  ;;  %1974 = vmatprep.subr.bf16.mxu1 %v3914_v58  ;;  %v2085_v56 = vld [vmem:[#allocation6 + $0xa0] sm:$0xff]  ;;  %v3216_v57 = vpack.c.bf16 %v2086_v51, %v2082_v50  ;;  %v3344_v58 = vpack.c.bf16 %v2088_v53, %v2084_v52  ;;  %v2128_v50 = vld [vmem:[#allocation6 + $0x1f8] sm:$0xff] }
 0x118   :  { %v2121_v53 = vld [vmem:[#allocation6 + $0x1c0] sm:$0xff] }
 0x11a   :  { %1811 = vmatpush1.bf16.msra.mxu0 %v3909_v59  ;;  %1975 = vmatpush1.bf16.msra.mxu1 %v3912_v60  ;;  %v2083_v59 = vld [vmem:[#allocation6 + $0x90] sm:$0xff] }
 0x11b   :  { %1812 = vmatprep.subr.bf16.mxu0 %v3917_v61  ;;  %1976 = vmatprep.subr.bf16.mxu1 %v3920_v62  ;;  %v2087_v60 = vld [vmem:[#allocation6 + $0xb0] sm:$0xff]  ;;  %v2090_v61 = vld [vmem:[#allocation6 + $0xc8] sm:$0xff] }
 0x11c   :  { %v2094_v62 = vld [vmem:[#allocation6 + $0xe8] sm:$0xff] }
 0x11e   :  { %1813 = vmatpush1.bf16.msra.mxu0 %v3915_v63  ;;  %1977 = vmatpush1.bf16.msra.mxu1 %v3918_v0  ;;  %v2092_v63 = vld [vmem:[#allocation6 + $0xd8] sm:$0xff] }
 0x11f   :  { %1814 = vmatprep.subr.bf16.mxu0 %v3923_v1  ;;  %1978 = vmatprep.subr.bf16.mxu1 %v3926_v2  ;;  %v2096_v0 = vld [vmem:[#allocation6 + $0xf8] sm:$0xff]  ;;  %v3218_v1 = vpack.c.bf16 %v2085_v56, %v2081_v55  ;;  %v3346_v2 = vpack.c.bf16 %v2087_v60, %v2083_v59  ;;  %v3364_v55 = vpack.c.bf16 %v2128_v50, %v2124_v49  ;;  %v2123_v56 = vld [vmem:[#allocation6 + $0x1d0] sm:$0xff]  ;;  %v2134_v59 = vld [vmem:[#allocation6 + $0x228] sm:$0xff] }
 0x120   :  { %v2132_v60 = vld [vmem:[#allocation6 + $0x218] sm:$0xff] }
 0x121   :  { %v2168_v50 = vld [vmem:[#allocation6 + $0x338] sm:$0xff] }
 0x122   :  { %1815 = vmatpush1.bf16.msra.mxu0 %v3921_v3  ;;  %1979 = vmatpush1.bf16.msra.mxu1 %v3924_v4  ;;  %v2089_v3 = vld [vmem:[#allocation6 + $0xc0] sm:$0xff] }
 0x123   :  { %1816 = vmatprep.subr.bf16.mxu0 %v3929_v5  ;;  %1980 = vmatprep.subr.bf16.mxu1 %v3932_v6  ;;  %v2093_v4 = vld [vmem:[#allocation6 + $0xe0] sm:$0xff]  ;;  %v3220_v5 = vpack.c.bf16 %v2094_v62, %v2090_v61  ;;  %v3348_v6 = vpack.c.bf16 %v2096_v0, %v2092_v63  ;;  %v2136_v61 = vld [vmem:[#allocation6 + $0x238] sm:$0xff] }
 0x124   :  { %v2129_v0 = vld [vmem:[#allocation6 + $0x200] sm:$0xff] }
 0x126   :  { %1817 = vmatpush1.bf16.msra.mxu0 %v3927_v7  ;;  %1981 = vmatpush1.bf16.msra.mxu1 %v3930_v8  ;;  %v2091_v7 = vld [vmem:[#allocation6 + $0xd0] sm:$0xff] }
 0x127   :  { %1818 = vmatprep.subr.bf16.mxu0 %v3935_v9  ;;  %1982 = vmatprep.subr.bf16.mxu1 %v3938_v10  ;;  %v2095_v8 = vld [vmem:[#allocation6 + $0xf0] sm:$0xff]  ;;  %v2098_v9 = vld [vmem:[#allocation6 + $0x108] sm:$0xff] }
 0x128   :  { %v2102_v10 = vld [vmem:[#allocation6 + $0x128] sm:$0xff] }
 0x12a   :  { %1819 = vmatpush1.bf16.msra.mxu0 %v3933_v11  ;;  %1983 = vmatpush1.bf16.msra.mxu1 %v3936_v12  ;;  %v2100_v11 = vld [vmem:[#allocation6 + $0x118] sm:$0xff] }
 0x12b   :  { %1820 = vmatprep.subr.bf16.mxu0 %v3941_v13  ;;  %1984 = vmatprep.subr.bf16.mxu1 %v3944_v14  ;;  %v2104_v12 = vld [vmem:[#allocation6 + $0x138] sm:$0xff]  ;;  %v3222_v13 = vpack.c.bf16 %v2093_v4, %v2089_v3  ;;  %v3350_v14 = vpack.c.bf16 %v2095_v8, %v2091_v7  ;;  %v3368_v3 = vpack.c.bf16 %v2136_v61, %v2132_v60  ;;  %v2131_v4 = vld [vmem:[#allocation6 + $0x210] sm:$0xff]  ;;  %v2142_v7 = vld [vmem:[#allocation6 + $0x268] sm:$0xff] }
 0x12c   :  { %v2140_v8 = vld [vmem:[#allocation6 + $0x258] sm:$0xff] }
 0x12d   :  { %v2176_v61 = vld [vmem:[#allocation6 + $0x378] sm:$0xff] }
 0x12e   :  { %1821 = vmatpush1.bf16.msra.mxu0 %v3939_v16  ;;  %1985 = vmatpush1.bf16.msra.mxu1 %v3942_v17  ;;  %v2097_v16 = vld [vmem:[#allocation6 + $0x100] sm:$0xff] }
 0x12f   :  { %1822 = vmatprep.subr.bf16.mxu0 %v3947_v18  ;;  %1986 = vmatprep.subr.bf16.mxu1 %v3950_v19  ;;  %v2101_v17 = vld [vmem:[#allocation6 + $0x120] sm:$0xff]  ;;  %v3224_v18 = vpack.c.bf16 %v2102_v10, %v2098_v9  ;;  %v3352_v19 = vpack.c.bf16 %v2104_v12, %v2100_v11  ;;  %v2144_v9 = vld [vmem:[#allocation6 + $0x278] sm:$0xff] }
 0x130   :  { %v3226_v28 = vpack.c.bf16 %v2101_v17, %v2097_v16  ;;  %v2137_v12 = vld [vmem:[#allocation6 + $0x240] sm:$0xff]  ;;  %v3372_v16 = vpack.c.bf16 %v2144_v9, %v2140_v8  ;;  %v2139_v17 = vld [vmem:[#allocation6 + $0x250] sm:$0xff]  ;;  %v2184_v9 = vld [vmem:[#allocation6 + $0x3b8] sm:$0xff] }
 0x132   :  { %1823 = vmatpush1.bf16.msra.mxu0 %v3945_v22  ;;  %1987 = vmatpush1.bf16.msra.mxu1 %v3948_v23  ;;  %v2099_v22 = vld [vmem:[#allocation6 + $0x110] sm:$0xff] }
 0x133   :  { %1824 = vmatprep.subr.bf16.mxu0 %v3953_v24  ;;  %1988 = vmatprep.subr.bf16.mxu1 %v3956_v25  ;;  %v2103_v23 = vld [vmem:[#allocation6 + $0x130] sm:$0xff]  ;;  %v2106_v24 = vld [vmem:[#allocation6 + $0x148] sm:$0xff] }
 0x134   :  { %v2110_v25 = vld [vmem:[#allocation6 + $0x168] sm:$0xff]  ;;  %v3354_v29 = vpack.c.bf16 %v2103_v23, %v2099_v22  ;;  %v2148_v23 = vld [vmem:[#allocation6 + $0x298] sm:$0xff] }
 0x135   :  { %v3228_v15 = vpack.c.bf16 %v2110_v25, %v2106_v24  ;;  %v2150_v22 = vld [vmem:[#allocation6 + $0x2a8] sm:$0xff]  ;;  %v2152_v24 = vld [vmem:[#allocation6 + $0x2b8] sm:$0xff] }
 0x136   :  { %1825 = vmatpush1.bf16.msra.mxu0 %v3951_v30  ;;  %1989 = vmatpush1.bf16.msra.mxu1 %v3954_v31  ;;  %v2105_v30 = vld [vmem:[#allocation6 + $0x140] sm:$0xff] }
 0x137   :  { %3209 = vmatprep.subr.bf16.mxu0 %v3208_v33  ;;  %3337 = vmatprep.subr.bf16.mxu1 %v3336_v34  ;;  %v2109_v31 = vld [vmem:[#allocation6 + $0x160] sm:$0xff]  ;;  %v2107_v33 = vld [vmem:[#allocation6 + $0x150] sm:$0xff] }
 0x138   :  { %v2111_v34 = vld [vmem:[#allocation6 + $0x170] sm:$0xff]  ;;  %v3230_v38 = vpack.c.bf16 %v2109_v31, %v2105_v30  ;;  %v3376_v30 = vpack.c.bf16 %v2152_v24, %v2148_v23  ;;  %v2192_v24 = vld [vmem:[#allocation6 + $0x3f8] sm:$0xff] }
 0x139   :  { %1827 = vmatmul.mubr.bf16.vlgmr.msra.gmra.mrb[0].mxu0 %v380_v40  ;;  %1991 = vmatmul.mubr.bf16.vlgmr.msra.gmra.mrb[0].mxu1 %v380_v40  ;;  %v3358_v39 = vpack.c.bf16 %v2111_v34, %v2107_v33  ;;  %v2113_v40 = vld [vmem:[#allocation6 + $0x180] sm:$0xff]  ;;  %v2147_v31 = vld [vmem:[#allocation6 + $0x290] sm:$0xff]  ;;  %v2158_v33 = vld [vmem:[#allocation6 + $0x2e8] sm:$0xff] }
 0x13a   :  { %3211 = vmatpush1.bf16.msra.mxu0 %v3210_v41  ;;  %3339 = vmatpush1.bf16.msra.mxu1 %v3338_v42  ;;  %v2117_v41 = vld [vmem:[#allocation6 + $0x1a0] sm:$0xff]  ;;  %v3232_v42 = vpack.c.bf16 %v2118_v36, %v2114_v35  ;;  %v2156_v34 = vld [vmem:[#allocation6 + $0x2d8] sm:$0xff] }
 0x13b   :  { %3213 = vmatprep.subr.bf16.mxu0 %v3212_v46  ;;  %3341 = vmatprep.subr.bf16.mxu1 %v3340_v47  ;;  %v2119_v46 = vld [vmem:[#allocation6 + $0x1b0] sm:$0xff]  ;;  %v2122_v47 = vld [vmem:[#allocation6 + $0x1c8] sm:$0xff]  ;;  %v3234_v51 = vpack.c.bf16 %v2117_v41, %v2113_v40  ;;  %v2160_v35 = vld [vmem:[#allocation6 + $0x2f8] sm:$0xff] }
 0x13c   :  { %v3362_v52 = vpack.c.bf16 %v2119_v46, %v2115_v45  ;;  %v2157_v40 = vld [vmem:[#allocation6 + $0x2e0] sm:$0xff]  ;;  %v2155_v41 = vld [vmem:[#allocation6 + $0x2d0] sm:$0xff]  ;;  %v2162_v46 = vld [vmem:[#allocation6 + $0x308] sm:$0xff] }
 0x13e   :  { %3215 = vmatpush1.bf16.msra.mxu0 %v3214_v21  ;;  %3343 = vmatpush1.bf16.msra.mxu1 %v3342_v54  ;;  %v2125_v21 = vld [vmem:[#allocation6 + $0x1e0] sm:$0xff]  ;;  %v3236_v54 = vpack.c.bf16 %v2126_v48, %v2122_v47  ;;  %v2166_v47 = vld [vmem:[#allocation6 + $0x328] sm:$0xff]  ;;  %v2164_v48 = vld [vmem:[#allocation6 + $0x318] sm:$0xff] }
 0x13f   :  { %3217 = vmatprep.subr.bf16.mxu0 %v3216_v57  ;;  %3345 = vmatprep.subr.bf16.mxu1 %v3344_v58  ;;  %v2127_v57 = vld [vmem:[#allocation6 + $0x1f0] sm:$0xff]  ;;  %v2130_v58 = vld [vmem:[#allocation6 + $0x208] sm:$0xff]  ;;  %v3238_v62 = vpack.c.bf16 %v2125_v21, %v2121_v53  ;;  %v3256_v49 = vpack.c.bf16 %v2166_v47, %v2162_v46  ;;  %v3384_v53 = vpack.c.bf16 %v2168_v50, %v2164_v48 }
 0x140   :  { %v3366_v63 = vpack.c.bf16 %v2127_v57, %v2123_v56  ;;  %v2170_v57 = vld [vmem:[#allocation6 + $0x348] sm:$0xff] }
 0x142   :  { %3219 = vmatpush1.bf16.msra.mxu0 %v3218_v1  ;;  %3347 = vmatpush1.bf16.msra.mxu1 %v3346_v2  ;;  %v2133_v1 = vld [vmem:[#allocation6 + $0x220] sm:$0xff]  ;;  %v3240_v2 = vpack.c.bf16 %v2134_v59, %v2130_v58  ;;  %v2174_v58 = vld [vmem:[#allocation6 + $0x368] sm:$0xff]  ;;  %v2172_v59 = vld [vmem:[#allocation6 + $0x358] sm:$0xff] }
 0x143   :  { %3221 = vmatprep.subr.bf16.mxu0 %v3220_v5  ;;  %3349 = vmatprep.subr.bf16.mxu1 %v3348_v6  ;;  %v2135_v5 = vld [vmem:[#allocation6 + $0x230] sm:$0xff]  ;;  %v2138_v6 = vld [vmem:[#allocation6 + $0x248] sm:$0xff]  ;;  %v3242_v10 = vpack.c.bf16 %v2133_v1, %v2129_v0  ;;  %v3260_v60 = vpack.c.bf16 %v2174_v58, %v2170_v57  ;;  %v3388_v0 = vpack.c.bf16 %v2176_v61, %v2172_v59 }
 0x144   :  { %v3370_v11 = vpack.c.bf16 %v2135_v5, %v2131_v4  ;;  %v2178_v5 = vld [vmem:[#allocation6 + $0x388] sm:$0xff] }
 0x146   :  { %3223 = vmatpush1.bf16.msra.mxu0 %v3222_v13  ;;  %3351 = vmatpush1.bf16.msra.mxu1 %v3350_v14  ;;  %v2141_v13 = vld [vmem:[#allocation6 + $0x260] sm:$0xff]  ;;  %v3244_v14 = vpack.c.bf16 %v2142_v7, %v2138_v6  ;;  %v2182_v6 = vld [vmem:[#allocation6 + $0x3a8] sm:$0xff]  ;;  %v2180_v7 = vld [vmem:[#allocation6 + $0x398] sm:$0xff] }
 0x147   :  { %3225 = vmatprep.subr.bf16.mxu0 %v3224_v18  ;;  %3353 = vmatprep.subr.bf16.mxu1 %v3352_v19  ;;  %v2143_v18 = vld [vmem:[#allocation6 + $0x270] sm:$0xff]  ;;  %v2146_v19 = vld [vmem:[#allocation6 + $0x288] sm:$0xff]  ;;  %v3246_v25 = vpack.c.bf16 %v2141_v13, %v2137_v12  ;;  %v3264_v8 = vpack.c.bf16 %v2182_v6, %v2178_v5  ;;  %v3392_v12 = vpack.c.bf16 %v2184_v9, %v2180_v7  ;;  %v2193_v5 = vld [vmem:[#allocation6 + $0x400] sm:$0xff] }
 0x148   :  { %v3374_v26 = vpack.c.bf16 %v2143_v18, %v2139_v17  ;;  %v2186_v18 = vld [vmem:[#allocation6 + $0x3c8] sm:$0xff]  ;;  %v2197_v6 = vld [vmem:[#allocation6 + $0x420] sm:$0xff]  ;;  %v2195_v7 = vld [vmem:[#allocation6 + $0x410] sm:$0xff] }
 0x14a   :  { %3227 = vmatpush1.bf16.msra.mxu0 %v3226_v28  ;;  %3355 = vmatpush1.bf16.msra.mxu1 %v3354_v29  ;;  %v2149_v28 = vld [vmem:[#allocation6 + $0x2a0] sm:$0xff]  ;;  %v3248_v29 = vpack.c.bf16 %v2150_v22, %v2146_v19  ;;  %v2190_v19 = vld [vmem:[#allocation6 + $0x3e8] sm:$0xff]  ;;  %v2188_v22 = vld [vmem:[#allocation6 + $0x3d8] sm:$0xff] }
 0x14b   :  { %3229 = vmatprep.subr.bf16.mxu0 %v3228_v15  ;;  %3357 = vmatprep.subr.bf16.mxu1 %v3356_v32  ;;  %v2151_v15 = vld [vmem:[#allocation6 + $0x2b0] sm:$0xff]  ;;  %v2154_v32 = vld [vmem:[#allocation6 + $0x2c8] sm:$0xff]  ;;  %v3250_v36 = vpack.c.bf16 %v2149_v28, %v2145_v27  ;;  %v3268_v23 = vpack.c.bf16 %v2190_v19, %v2186_v18  ;;  %v3396_v27 = vpack.c.bf16 %v2192_v24, %v2188_v22  ;;  %v2201_v22 = vld [vmem:[#allocation6 + $0x440] sm:$0xff] }
 0x14c   :  { %v3378_v20 = vpack.c.bf16 %v2151_v15, %v2147_v31  ;;  %v2194_v15 = vld [vmem:[#allocation6 + $0x408] sm:$0xff]  ;;  %v2203_v24 = vld [vmem:[#allocation6 + $0x450] sm:$0xff] }
 0x14e   :  { %3231 = vmatpush1.bf16.msra.mxu0 %v3230_v38  ;;  %3359 = vmatpush1.bf16.msra.mxu1 %v3358_v39  ;;  %v3252_v38 = vpack.c.bf16 %v2158_v33, %v2154_v32  ;;  %v3380_v39 = vpack.c.bf16 %v2160_v35, %v2156_v34  ;;  %v2198_v32 = vld [vmem:[#allocation6 + $0x428] sm:$0xff]  ;;  %v2196_v33 = vld [vmem:[#allocation6 + $0x418] sm:$0xff] }
 0x14f   :  { %3233 = vmatprep.subr.bf16.mxu0 %v3232_v42  ;;  %3361 = vmatprep.subr.bf16.mxu1 %v3360_v44  ;;  %v2159_v42 = vld [vmem:[#allocation6 + $0x2f0] sm:$0xff]  ;;  %v3254_v44 = vpack.c.bf16 %v2157_v40, %v2153_v37  ;;  %v3272_v34 = vpack.c.bf16 %v2198_v32, %v2194_v15  ;;  %v2200_v35 = vld [vmem:[#allocation6 + $0x438] sm:$0xff]  ;;  %v2039_v40 = vsub.s32 2, %v4139_v43 }
 0x150   :  { %v3382_v45 = vpack.c.bf16 %v2159_v42, %v2155_v41  ;;  %v2043_v41 = vsub.s32 3, %v4139_v43  ;;  %v2027_v42 = vld [vmem:[%s4221_s2] sm:$0xf]  ;;  %v2216_v15 = vld [vmem:[#allocation6 + $0x4b8] sm:$0xff] }
 0x151   :  { %v2040_v47 = vrot.slane %v2027_v42, %v2039_v40 }
 0x152   :  { %3235 = vmatpush1.bf16.msra.mxu0 %v3234_v51  ;;  %3363 = vmatpush1.bf16.msra.mxu1 %v3362_v52  ;;  %v2161_v51 = vld [vmem:[#allocation6 + $0x300] sm:$0xff]  ;;  %v2044_v48 = vrot.slane %v2027_v42, %v2043_v41 }
 0x153   :  { %3237 = vmatprep.subr.bf16.mxu0 %v3236_v54  ;;  %3365 = vmatprep.subr.bf16.mxu1 %v3364_v55  ;;  %v2165_v52 = vld [vmem:[#allocation6 + $0x320] sm:$0xff]  ;;  %v2163_v54 = vld [vmem:[#allocation6 + $0x310] sm:$0xff] }
 0x154   :  { %v3258_v21 = vpack.c.bf16 %v2165_v52, %v2161_v51  ;;  %v2167_v55 = vld [vmem:[#allocation6 + $0x330] sm:$0xff]  ;;  %v2046_v51 = vcombine.low %v2040_v47, %v2044_v48  ;;  %v2224_v47 = vld [vmem:[#allocation6 + $0x4f8] sm:$0xff] }
 0x155   :  { %v3386_v56 = vpack.c.bf16 %v2167_v55, %v2163_v54 }
 0x156   :  { %3239 = vmatpush1.bf16.msra.mxu0 %v3238_v62  ;;  %3367 = vmatpush1.bf16.msra.mxu1 %v3366_v63  ;;  %v2169_v62 = vld [vmem:[#allocation6 + $0x340] sm:$0xff] }
 0x157   :  { %3241 = vmatprep.subr.bf16.mxu0 %v3240_v2  ;;  %3369 = vmatprep.subr.bf16.mxu1 %v3368_v3  ;;  %v2173_v63 = vld [vmem:[#allocation6 + $0x360] sm:$0xff]  ;;  %v2171_v2 = vld [vmem:[#allocation6 + $0x350] sm:$0xff] }
 0x158   :  { %v3262_v1 = vpack.c.bf16 %v2173_v63, %v2169_v62  ;;  %v2175_v3 = vld [vmem:[#allocation6 + $0x370] sm:$0xff] }
 0x159   :  { %v3390_v4 = vpack.c.bf16 %v2175_v3, %v2171_v2 }
 0x15a   :  { %3243 = vmatpush1.bf16.msra.mxu0 %v3242_v10  ;;  %3371 = vmatpush1.bf16.msra.mxu1 %v3370_v11  ;;  %v2177_v10 = vld [vmem:[#allocation6 + $0x380] sm:$0xff] }
 0x15b   :  { %3245 = vmatprep.subr.bf16.mxu0 %v3244_v14  ;;  %3373 = vmatprep.subr.bf16.mxu1 %v3372_v16  ;;  %v2181_v11 = vld [vmem:[#allocation6 + $0x3a0] sm:$0xff]  ;;  %v2179_v14 = vld [vmem:[#allocation6 + $0x390] sm:$0xff] }
 0x15c   :  { %v3266_v13 = vpack.c.bf16 %v2181_v11, %v2177_v10  ;;  %v2183_v16 = vld [vmem:[#allocation6 + $0x3b0] sm:$0xff]  ;;  %v2202_v11 = vld [vmem:[#allocation6 + $0x448] sm:$0xff] }
 0x15d   :  { %v3394_v17 = vpack.c.bf16 %v2183_v16, %v2179_v14  ;;  %v2208_v14 = vld [vmem:[#allocation6 + $0x478] sm:$0xff] }
 0x15e   :  { %3247 = vmatpush1.bf16.msra.mxu0 %v3246_v25  ;;  %3375 = vmatpush1.bf16.msra.mxu1 %v3374_v26  ;;  %v2185_v25 = vld [vmem:[#allocation6 + $0x3c0] sm:$0xff] }
 0x15f   :  { %3249 = vmatprep.subr.bf16.mxu0 %v3248_v29  ;;  %3377 = vmatprep.subr.bf16.mxu1 %v3376_v30  ;;  %v2189_v26 = vld [vmem:[#allocation6 + $0x3e0] sm:$0xff]  ;;  %v2187_v29 = vld [vmem:[#allocation6 + $0x3d0] sm:$0xff] }
 0x160   :  { %v3270_v28 = vpack.c.bf16 %v2189_v26, %v2185_v25  ;;  %v2191_v30 = vld [vmem:[#allocation6 + $0x3f0] sm:$0xff]  ;;  %v2210_v26 = vld [vmem:[#allocation6 + $0x488] sm:$0xff] }
 0x161   :  { %v3398_v31 = vpack.c.bf16 %v2191_v30, %v2187_v29  ;;  %v2207_v25 = vld [vmem:[#allocation6 + $0x470] sm:$0xff]  ;;  %v2214_v30 = vld [vmem:[#allocation6 + $0x4a8] sm:$0xff] }
 0x162   :  { %3251 = vmatpush1.bf16.msra.mxu0 %v3250_v36  ;;  %3379 = vmatpush1.bf16.msra.mxu1 %v3378_v20  ;;  %v3400_v36 = vpack.c.bf16 %v2200_v35, %v2196_v33  ;;  %v4061_v20 = vmov 1983009808   ;;  %v3406_v33 = vpack.c.bf16 %v2207_v25, %v2203_v24  ;;  %v2213_v35 = vld [vmem:[#allocation6 + $0x4a0] sm:$0xff] }
 0x163   :  { %3253 = vmatprep.subr.bf16.mxu0 %v3252_v38  ;;  %3381 = vmatprep.subr.bf16.mxu1 %v3380_v39  ;;  %v2006_v37 = vunpack.c.l.s4 %v4061_v20  ;;  %v2031_v38 = vsub.s32 0, %v4139_v43  ;;  %v2035_v39 = vsub.s32 1, %v4139_v43  ;;  %v2241_v25 = vld [vmem:[#allocation6 + $0x580] sm:$0xff] }
 0x165   :  { %v2036_v46 = vrot.slane %v2027_v42, %v2035_v39 }
 0x166   :  { %3255 = vmatpush1.bf16.msra.mxu0 %v3254_v44  ;;  %3383 = vmatpush1.bf16.msra.mxu1 %v3382_v45  ;;  %v2007_v44 = vunpack.c.0.s8 %v2006_v37  ;;  %v2032_v45 = vrot.slane %v2027_v42, %v2031_v38  ;;  %v2211_v37 = vld [vmem:[#allocation6 + $0x490] sm:$0xff] }
 0x167   :  { %3257 = vmatprep.subr.bf16.mxu0 %v3256_v49  ;;  %3385 = vmatprep.subr.bf16.mxu1 %v3384_v53  ;;  %v2215_v42 = vld [vmem:[#allocation6 + $0x4b0] sm:$0xff] }
 0x168   :  { %v2010_v49 = vsub.s32 %v2007_v44, %v4139_v43  ;;  %v2045_v50 = vcombine.low %v2032_v45, %v2036_v46  ;;  %v2218_v44 = vld [vmem:[#allocation6 + $0x4c8] sm:$0xff]  ;;  %v2220_v46 = vld [vmem:[#allocation6 + $0x4d8] sm:$0xff]  ;;  %v3137_v43 = vld [vmem:[%s4225_s6] ss:$0 sm:$0xff] }
 0x169   :  { %v2222_v45 = vld [vmem:[#allocation6 + $0x4e8] sm:$0xff] }
 0x16a   :  { %3259 = vmatpush1.bf16.msra.mxu0 %v3258_v21  ;;  %3387 = vmatpush1.bf16.msra.mxu1 %v3386_v56  ;;  %v2053_v21 = vrot.slane %v2045_v50, %v2010_v49  ;;  %v2060_v54 = vrot.slane %v2046_v51, %v2010_v49  ;;  %v2217_v50 = vld [vmem:[#allocation6 + $0x4c0] sm:$0xff] }
 0x16b   :  { %3261 = vmatprep.subr.bf16.mxu0 %v3260_v60  ;;  %3389 = vmatprep.subr.bf16.mxu1 %v3388_v0  ;;  %v2221_v51 = vld [vmem:[#allocation6 + $0x4e0] sm:$0xff] }
 0x16e   :  { %3263 = vmatpush1.bf16.msra.mxu0 %v3262_v1  ;;  %3391 = vmatpush1.bf16.msra.mxu1 %v3390_v4  ;;  %v2061_v1 = vcombine.low %v2053_v21, %v2060_v54  ;;  %v2219_v21 = vld [vmem:[#allocation6 + $0x4d0] sm:$0xff] }
 0x16f   :  { %3265 = vmatprep.subr.bf16.mxu0 %v3264_v8  ;;  %3393 = vmatprep.subr.bf16.mxu1 %v3392_v12  ;;  %v2199_v8 = vld [vmem:[#allocation6 + $0x430] sm:$0xff]  ;;  %v2206_v12 = vld [vmem:[#allocation6 + $0x468] sm:$0xff] }
 0x170   :  { %v3402_v18 = vpack.c.bf16 %v2199_v8, %v2195_v7  ;;  %v2223_v54 = vld [vmem:[#allocation6 + $0x4f0] sm:$0xff] }
 0x172   :  { %3267 = vmatpush1.bf16.msra.mxu0 %v3266_v13  ;;  %3395 = vmatpush1.bf16.msra.mxu1 %v3394_v17  ;;  %v2204_v13 = vld [vmem:[#allocation6 + $0x458] sm:$0xff]  ;;  %v3274_v17 = vpack.c.bf16 %v2197_v6, %v2193_v5 }
 0x173   :  { %3269 = vmatprep.subr.bf16.mxu0 %v3268_v23  ;;  %3397 = vmatprep.subr.bf16.mxu1 %v3396_v27  ;;  %v2205_v23 = vld [vmem:[#allocation6 + $0x460] sm:$0xff]  ;;  %v3404_v29 = vpack.c.bf16 %v2208_v14, %v2204_v13  ;;  %v2236_v5 = vld [vmem:[#allocation6 + $0x558] sm:$0xff]  ;;  %v2235_v13 = vld [vmem:[#allocation6 + $0x550] sm:$0xff] }
 0x174   :  { %v3278_v32 = vpack.c.bf16 %v2205_v23, %v2201_v22  ;;  %v2240_v6 = vld [vmem:[#allocation6 + $0x578] sm:$0xff]  ;;  %v2239_v14 = vld [vmem:[#allocation6 + $0x570] sm:$0xff] }
 0x175   :  { %v2248_v22 = vld [vmem:[#allocation6 + $0x5b8] sm:$0xff]  ;;  %v3422_v24 = vpack.c.bf16 %v2239_v14, %v2235_v13 }
 0x176   :  { %3271 = vmatpush1.bf16.msra.mxu0 %v3270_v28  ;;  %3399 = vmatpush1.bf16.msra.mxu1 %v3398_v31  ;;  %v3276_v28 = vpack.c.bf16 %v2206_v12, %v2202_v11  ;;  %v2212_v31 = vld [vmem:[#allocation6 + $0x498] sm:$0xff]  ;;  %v3420_v12 = vpack.c.bf16 %v2240_v6, %v2236_v5  ;;  %v2274_v5 = vld [vmem:[#allocation6 + $0x688] sm:$0xff] }
 0x177   :  { %3273 = vmatprep.subr.bf16.mxu0 %v3272_v34  ;;  %3401 = vmatprep.subr.bf16.mxu1 %v3400_v36  ;;  %v2209_v34 = vld [vmem:[#allocation6 + $0x480] sm:$0xff]  ;;  %v3280_v36 = vpack.c.bf16 %v2214_v30, %v2210_v26  ;;  %v3408_v20 = vpack.c.bf16 %v2216_v15, %v2212_v31  ;;  %v2247_v30 = vld [vmem:[#allocation6 + $0x5b0] sm:$0xff]  ;;  %v2250_v31 = vld [vmem:[#allocation6 + $0x5c8] sm:$0xff] }
 0x178   :  { %v3282_v48 = vpack.c.bf16 %v2213_v35, %v2209_v34  ;;  %v2245_v26 = vld [vmem:[#allocation6 + $0x5a0] sm:$0xff]  ;;  %v2254_v15 = vld [vmem:[#allocation6 + $0x5e8] sm:$0xff] }
 0x179   :  { %v3298_v34 = vpack.c.bf16 %v2245_v26, %v2241_v25  ;;  %v2278_v6 = vld [vmem:[#allocation6 + $0x6a8] sm:$0xff] }
 0x17a   :  { %v3312_v13 = vpack.c.bf16 %v2278_v6, %v2274_v5  ;;  %v2307_v5 = vld [vmem:[#allocation6 + $0x790] sm:$0xff] }
 0x17b   :  { %v2311_v6 = vld [vmem:[#allocation6 + $0x7b0] sm:$0xff] }
 0x20c   :  { %v1828_v52 = vpop.f32.mrb[0].mxu0  ;;  %v1992_v53 = vpop.f32.mrb[0].mxu1 }
 0x20d   :  { %v1830_v55 = vpop.f32.mrb[1].mxu0  ;;  %v1994_v56 = vpop.f32.mrb[1].mxu1 }
 0x20e   :  { %v2003_v57 = vcombine.low %v1828_v52, %v1830_v55  ;;  %v2004_v58 = vcombine.low %v1992_v53, %v1994_v56  ;;  %v1832_v59 = vpop.f32.mrb[2].mxu0  ;;  %v1996_v60 = vpop.f32.mrb[2].mxu1  ;;  %v3284_v52 = vpack.c.bf16 %v2222_v45, %v2218_v44  ;;  %v3412_v53 = vpack.c.bf16 %v2224_v47, %v2220_v46  ;;  %v2226_v55 = vld [vmem:[#allocation6 + $0x508] sm:$0xff]  ;;  %v2251_v44 = vld [vmem:[#allocation6 + $0x5d0] sm:$0xff] }
 0x20f   :  { %v1833_v61 = vpop.f32.mrb[3].mxu0  ;;  %v1997_v62 = vpop.f32.mrb[3].mxu1  ;;  %v2230_v56 = vld [vmem:[#allocation6 + $0x528] sm:$0xff]  ;;  %v3286_v59 = vpack.c.bf16 %v2221_v51, %v2217_v50  ;;  %v3414_v60 = vpack.c.bf16 %v2223_v54, %v2219_v21  ;;  %v2255_v45 = vld [vmem:[#allocation6 + $0x5f0] sm:$0xff] }
 0x210   :  { %v2011_v63 = vrot.slane %v2003_v57, %v2010_v49  ;;  %v2018_v0 = vrot.slane %v2004_v58, %v2010_v49  ;;  %v2228_v57 = vld [vmem:[#allocation6 + $0x518] sm:$0xff]  ;;  %v2225_v61 = vld [vmem:[#allocation6 + $0x500] sm:$0xff]  ;;  %v2258_v46 = vld [vmem:[#allocation6 + $0x608] sm:$0xff]  ;;  %v3430_v51 = vpack.c.bf16 %v2255_v45, %v2251_v44 }
 0x211   :  { %v2232_v58 = vld [vmem:[#allocation6 + $0x538] sm:$0xff]  ;;  %v2229_v62 = vld [vmem:[#allocation6 + $0x520] sm:$0xff]  ;;  %v2262_v47 = vld [vmem:[#allocation6 + $0x628] sm:$0xff] }
 0x212   :  { %v2019_v2 = vcombine.low %v2011_v63, %v2018_v0  ;;  %v3288_v63 = vpack.c.bf16 %v2230_v56, %v2226_v55  ;;  %v3416_v0 = vpack.c.bf16 %v2232_v58, %v2228_v57  ;;  %v3290_v7 = vpack.c.bf16 %v2229_v62, %v2225_v61  ;;  %v2259_v55 = vld [vmem:[#allocation6 + $0x610] sm:$0xff]  ;;  %v2266_v57 = vld [vmem:[#allocation6 + $0x648] sm:$0xff] }
 0x213   :  { %v3304_v21 = vpack.c.bf16 %v2262_v47, %v2258_v46  ;;  %v2263_v56 = vld [vmem:[#allocation6 + $0x630] sm:$0xff]  ;;  %v2270_v58 = vld [vmem:[#allocation6 + $0x668] sm:$0xff] }
 0x214   :  { %v2063_v3 = vadd.f32 %v2061_v1, %v2019_v2  ;;  %v2227_v1 = vld [vmem:[#allocation6 + $0x510] sm:$0xff]  ;;  %v3434_v62 = vpack.c.bf16 %v2263_v56, %v2259_v55 }
 0x215   :  { %v2231_v2 = vld [vmem:[#allocation6 + $0x530] sm:$0xff] }
 0x216   :  { %v2064_v4 = vmax.f32 %v2063_v3, 0.0  ;;  %v2234_v3 = vld [vmem:[#allocation6 + $0x548] sm:$0xff]  ;;  %v3418_v8 = vpack.c.bf16 %v2231_v2, %v2227_v1  ;;  %v3308_v1 = vpack.c.bf16 %v2270_v58, %v2266_v57  ;;  %v2291_v46 = vld [vmem:[#allocation6 + $0x710] sm:$0xff] }
 0x217   :  { %v2295_v47 = vld [vmem:[#allocation6 + $0x730] sm:$0xff] }
 0x218   :  { %v2344_v9 = vcombine.high %v2064_v4, %v2064_v4  ;;  %v2351_v10 = vrot.slane %v2064_v4, %v2010_v49  ;;  %v2238_v4 = vld [vmem:[#allocation6 + $0x568] sm:$0xff]  ;;  %v2299_v57 = vld [vmem:[#allocation6 + $0x750] sm:$0xff] }
 0x219   :  { %v3292_v11 = vpack.c.bf16 %v2238_v4, %v2234_v3  ;;  %v2267_v3 = vld [vmem:[#allocation6 + $0x650] sm:$0xff] }
 0x21a   :  { %v2359_v16 = vcombine.high %v2351_v10, %v2351_v10  ;;  %v4187_v19 = vrot.slane %v2344_v9, %v2010_v49  ;;  %v3410_v49 = vpack.c.bf16 %v2215_v42, %v2211_v37  ;;  %v2233_v9 = vld [vmem:[#allocation6 + $0x540] sm:$0xff]  ;;  %v3300_v37 = vpack.c.bf16 %v2254_v15, %v2250_v31  ;;  %v2271_v4 = vld [vmem:[#allocation6 + $0x670] sm:$0xff] }
 0x21b   :  { %v2283_v31 = vld [vmem:[#allocation6 + $0x6d0] sm:$0xff] }
 0x21c   :  { %2429 = vmatprep.mubr.f32.mxu0 %v2359_v16  ;;  %2571 = vmatprep.mubr.f32.mxu1 %v2359_v16  ;;  %v2360_v27 = vcombine.high %v4187_v19, %v4187_v19  ;;  %v2242_v16 = vld [vmem:[#allocation6 + $0x588] sm:$0xff]  ;;  %v2287_v15 = vld [vmem:[#allocation6 + $0x6f0] sm:$0xff] }
 0x21d   :  { %2430 = vmatmul.mubr.f32.vlgmr.msra.gmra.mrb[4].mxu0 %v2351_v10  ;;  %2572 = vmatmul.mubr.f32.vlgmr.msra.gmra.mrb[4].mxu1 %v2351_v10  ;;  %v2237_v10 = vld [vmem:[#allocation6 + $0x560] sm:$0xff]  ;;  %v2303_v58 = vld [vmem:[#allocation6 + $0x770] sm:$0xff] }
 0x21e   :  { %3275 = vmatpush1.bf16.msra.mxu0 %v3274_v17  ;;  %3403 = vmatpush1.bf16.msra.mxu1 %v3402_v18  ;;  %v2246_v17 = vld [vmem:[#allocation6 + $0x5a8] sm:$0xff]  ;;  %v2244_v18 = vld [vmem:[#allocation6 + $0x598] sm:$0xff]  ;;  %v3294_v23 = vpack.c.bf16 %v2237_v10, %v2233_v9  ;;  %v3438_v10 = vpack.c.bf16 %v2271_v4, %v2267_v3 }
 0x21f   :  { %2500 = vmatprep.mubr.f32.mxu0 %v2360_v27  ;;  %2642 = vmatprep.mubr.f32.mxu1 %v2360_v27  ;;  %v3296_v27 = vpack.c.bf16 %v2246_v17, %v2242_v16  ;;  %v2275_v16 = vld [vmem:[#allocation6 + $0x690] sm:$0xff] }
 0x220   :  { %3277 = vmatprep.subr.bf16.mxu0 %v3276_v28  ;;  %3405 = vmatprep.subr.bf16.mxu1 %v3404_v29  ;;  %v3424_v28 = vpack.c.bf16 %v2248_v22, %v2244_v18  ;;  %v2243_v29 = vld [vmem:[#allocation6 + $0x590] sm:$0xff]  ;;  %v2282_v18 = vld [vmem:[#allocation6 + $0x6c8] sm:$0xff] }
 0x221   :  { %v3426_v35 = vpack.c.bf16 %v2247_v30, %v2243_v29  ;;  %v2279_v17 = vld [vmem:[#allocation6 + $0x6b0] sm:$0xff]  ;;  %v2286_v22 = vld [vmem:[#allocation6 + $0x6e8] sm:$0xff] }
 0x222   :  { %3279 = vmatpush1.bf16.msra.mxu0 %v3278_v32  ;;  %3407 = vmatpush1.bf16.msra.mxu1 %v3406_v33  ;;  %v2252_v32 = vld [vmem:[#allocation6 + $0x5d8] sm:$0xff]  ;;  %v3442_v26 = vpack.c.bf16 %v2279_v17, %v2275_v16  ;;  %v3316_v29 = vpack.c.bf16 %v2286_v22, %v2282_v18  ;;  %v2315_v18 = vld [vmem:[#allocation6 + $0x7d0] sm:$0xff] }
 0x223   :  { %3281 = vmatprep.subr.bf16.mxu0 %v3280_v36  ;;  %3409 = vmatprep.subr.bf16.mxu1 %v3408_v20  ;;  %v2256_v33 = vld [vmem:[#allocation6 + $0x5f8] sm:$0xff]  ;;  %v2249_v36 = vld [vmem:[#allocation6 + $0x5c0] sm:$0xff]  ;;  %v2319_v22 = vld [vmem:[#allocation6 + $0x7f0] sm:$0xff] }
 0x224   :  { %v2253_v20 = vld [vmem:[#allocation6 + $0x5e0] sm:$0xff]  ;;  %v3428_v42 = vpack.c.bf16 %v2256_v33, %v2252_v32  ;;  %v2290_v32 = vld [vmem:[#allocation6 + $0x708] sm:$0xff] }
 0x225   :  { %v3302_v50 = vpack.c.bf16 %v2253_v20, %v2249_v36  ;;  %v2294_v33 = vld [vmem:[#allocation6 + $0x728] sm:$0xff]  ;;  %v3446_v20 = vpack.c.bf16 %v2287_v15, %v2283_v31 }
 0x226   :  { %3283 = vmatpush1.bf16.msra.mxu0 %v3282_v48  ;;  %3411 = vmatpush1.bf16.msra.mxu1 %v3410_v49  ;;  %v2260_v48 = vld [vmem:[#allocation6 + $0x618] sm:$0xff]  ;;  %v3320_v44 = vpack.c.bf16 %v2294_v33, %v2290_v32  ;;  %v2685_v32 = vld [vmem:[#allocation8 + $0x100] sm:$0xff]  ;;  %v2686_v33 = vld [vmem:[#allocation8 + $0x108] sm:$0xff] }
 0x227   :  { %3285 = vmatprep.subr.bf16.mxu0 %v3284_v52  ;;  %3413 = vmatprep.subr.bf16.mxu1 %v3412_v53  ;;  %v2264_v49 = vld [vmem:[#allocation6 + $0x638] sm:$0xff]  ;;  %v2257_v52 = vld [vmem:[#allocation6 + $0x600] sm:$0xff] }
 0x228   :  { %v2261_v53 = vld [vmem:[#allocation6 + $0x620] sm:$0xff]  ;;  %v3432_v54 = vpack.c.bf16 %v2264_v49, %v2260_v48  ;;  %v2298_v48 = vld [vmem:[#allocation6 + $0x748] sm:$0xff] }
 0x229   :  { %v3306_v61 = vpack.c.bf16 %v2261_v53, %v2257_v52  ;;  %v2302_v49 = vld [vmem:[#allocation6 + $0x768] sm:$0xff]  ;;  %v3450_v53 = vpack.c.bf16 %v2295_v47, %v2291_v46 }
 0x22a   :  { %3287 = vmatpush1.bf16.msra.mxu0 %v3286_v59  ;;  %3415 = vmatpush1.bf16.msra.mxu1 %v3414_v60  ;;  %v2268_v59 = vld [vmem:[#allocation6 + $0x658] sm:$0xff]  ;;  %v3324_v55 = vpack.c.bf16 %v2302_v49, %v2298_v48  ;;  %v2687_v48 = vld [vmem:[#allocation8 + $0x110] sm:$0xff] }
 0x22b   :  { %3289 = vmatprep.subr.bf16.mxu0 %v3288_v63  ;;  %3417 = vmatprep.subr.bf16.mxu1 %v3416_v0  ;;  %v2272_v60 = vld [vmem:[#allocation6 + $0x678] sm:$0xff]  ;;  %v2265_v63 = vld [vmem:[#allocation6 + $0x640] sm:$0xff] }
 0x22c   :  { %v2269_v0 = vld [vmem:[#allocation6 + $0x660] sm:$0xff]  ;;  %v3436_v2 = vpack.c.bf16 %v2272_v60, %v2268_v59  ;;  %v2306_v59 = vld [vmem:[#allocation6 + $0x788] sm:$0xff]  ;;  %v2688_v49 = vld [vmem:[#allocation8 + $0x118] sm:$0xff] }
 0x22d   :  { %v3310_v9 = vpack.c.bf16 %v2269_v0, %v2265_v63  ;;  %v2310_v60 = vld [vmem:[#allocation6 + $0x7a8] sm:$0xff]  ;;  %v3454_v0 = vpack.c.bf16 %v2303_v58, %v2299_v57 }
 0x22e   :  { %3291 = vmatpush1.bf16.msra.mxu0 %v3290_v7  ;;  %3419 = vmatpush1.bf16.msra.mxu1 %v3418_v8  ;;  %v2276_v7 = vld [vmem:[#allocation6 + $0x698] sm:$0xff]  ;;  %v3328_v3 = vpack.c.bf16 %v2310_v60, %v2306_v59  ;;  %v2689_v59 = vld [vmem:[#allocation8 + $0x120] sm:$0xff]  ;;  %v2690_v60 = vld [vmem:[#allocation8 + $0x128] sm:$0xff] }
 0x22f   :  { %3293 = vmatprep.subr.bf16.mxu0 %v3292_v11  ;;  %3421 = vmatprep.subr.bf16.mxu1 %v3420_v12  ;;  %v2280_v8 = vld [vmem:[#allocation6 + $0x6b8] sm:$0xff]  ;;  %v2273_v11 = vld [vmem:[#allocation6 + $0x680] sm:$0xff] }
 0x230   :  { %v2277_v12 = vld [vmem:[#allocation6 + $0x6a0] sm:$0xff]  ;;  %v3440_v14 = vpack.c.bf16 %v2280_v8, %v2276_v7  ;;  %v2314_v7 = vld [vmem:[#allocation6 + $0x7c8] sm:$0xff] }
 0x231   :  { %v3314_v25 = vpack.c.bf16 %v2277_v12, %v2273_v11  ;;  %v2318_v8 = vld [vmem:[#allocation6 + $0x7e8] sm:$0xff]  ;;  %v3458_v12 = vpack.c.bf16 %v2311_v6, %v2307_v5  ;;  %v2691_v6 = vld [vmem:[#allocation8 + $0x130] sm:$0xff] }
 0x232   :  { %3295 = vmatpush1.bf16.msra.mxu0 %v3294_v23  ;;  %3423 = vmatpush1.bf16.msra.mxu1 %v3422_v24  ;;  %v2284_v23 = vld [vmem:[#allocation6 + $0x6d8] sm:$0xff]  ;;  %v3332_v16 = vpack.c.bf16 %v2318_v8, %v2314_v7  ;;  %v2677_v8 = vld [vmem:[#allocation8 + $0xc0] sm:$0xff] }
 0x233   :  { %3297 = vmatprep.subr.bf16.mxu0 %v3296_v27  ;;  %3425 = vmatprep.subr.bf16.mxu1 %v3424_v28  ;;  %v2288_v24 = vld [vmem:[#allocation6 + $0x6f8] sm:$0xff]  ;;  %v2281_v27 = vld [vmem:[#allocation6 + $0x6c0] sm:$0xff] }
 0x234   :  { %v2285_v28 = vld [vmem:[#allocation6 + $0x6e0] sm:$0xff]  ;;  %v3444_v30 = vpack.c.bf16 %v2288_v24, %v2284_v23  ;;  %v2670_v24 = vld [vmem:[#allocation8 + $0x88] sm:$0xff]  ;;  %v2692_v7 = vld [vmem:[#allocation8 + $0x138] sm:$0xff] }
 0x235   :  { %v3318_v36 = vpack.c.bf16 %v2285_v28, %v2281_v27  ;;  %v2669_v23 = vld [vmem:[#allocation8 + $0x80] sm:$0xff]  ;;  %v3462_v28 = vpack.c.bf16 %v2319_v22, %v2315_v18 }
 0x236   :  { %3299 = vmatpush1.bf16.msra.mxu0 %v3298_v34  ;;  %3427 = vmatpush1.bf16.msra.mxu1 %v3426_v35  ;;  %v2292_v34 = vld [vmem:[#allocation6 + $0x718] sm:$0xff]  ;;  %v3464_v31 = vpack.c.bf16 %v2670_v24, %v2669_v23  ;;  %v2693_v22 = vld [vmem:[#allocation8 + $0x140] sm:$0xff]  ;;  %v2694_v23 = vld [vmem:[#allocation8 + $0x148] sm:$0xff] }
 0x237   :  { %3301 = vmatprep.subr.bf16.mxu0 %v3300_v37  ;;  %3429 = vmatprep.subr.bf16.mxu1 %v3428_v42  ;;  %v2296_v35 = vld [vmem:[#allocation6 + $0x738] sm:$0xff]  ;;  %v2289_v37 = vld [vmem:[#allocation6 + $0x700] sm:$0xff]  ;;  %v2679_v24 = vld [vmem:[#allocation8 + $0xd0] sm:$0xff] }
 0x238   :  { %v2293_v42 = vld [vmem:[#allocation6 + $0x720] sm:$0xff]  ;;  %v3448_v45 = vpack.c.bf16 %v2296_v35, %v2292_v34  ;;  %v2671_v34 = vld [vmem:[#allocation8 + $0x90] sm:$0xff]  ;;  %v2672_v35 = vld [vmem:[#allocation8 + $0x98] sm:$0xff] }
 0x239   :  { %v3322_v52 = vpack.c.bf16 %v2293_v42, %v2289_v37  ;;  %v3498_v42 = vpack.c.bf16 %v2686_v33, %v2685_v32  ;;  %v3468_v46 = vpack.c.bf16 %v2672_v35, %v2671_v34  ;;  %v2695_v33 = vld [vmem:[#allocation8 + $0x150] sm:$0xff]  ;;  %v2696_v34 = vld [vmem:[#allocation8 + $0x158] sm:$0xff]  ;;  %v2681_v35 = vld [vmem:[#allocation8 + $0xe0] sm:$0xff] }
 0x23a   :  { %3303 = vmatpush1.bf16.msra.mxu0 %v3302_v50  ;;  %3431 = vmatpush1.bf16.msra.mxu1 %v3430_v51  ;;  %v2300_v50 = vld [vmem:[#allocation6 + $0x758] sm:$0xff] }
 0x23b   :  { %3305 = vmatprep.subr.bf16.mxu0 %v3304_v21  ;;  %3433 = vmatprep.subr.bf16.mxu1 %v3432_v54  ;;  %v2304_v51 = vld [vmem:[#allocation6 + $0x778] sm:$0xff]  ;;  %v2297_v21 = vld [vmem:[#allocation6 + $0x740] sm:$0xff] }
 0x23c   :  { %v2301_v54 = vld [vmem:[#allocation6 + $0x760] sm:$0xff]  ;;  %v3452_v56 = vpack.c.bf16 %v2304_v51, %v2300_v50  ;;  %v2674_v51 = vld [vmem:[#allocation8 + $0xa8] sm:$0xff] }
 0x23d   :  { %v3326_v63 = vpack.c.bf16 %v2301_v54, %v2297_v21  ;;  %v2673_v50 = vld [vmem:[#allocation8 + $0xa0] sm:$0xff]  ;;  %v3502_v54 = vpack.c.bf16 %v2688_v49, %v2687_v48  ;;  %v2666_v48 = vld [vmem:[#allocation8 + $0x68] sm:$0xff] }
 0x23e   :  { %3307 = vmatpush1.bf16.msra.mxu0 %v3306_v61  ;;  %3435 = vmatpush1.bf16.msra.mxu1 %v3434_v62  ;;  %v2308_v61 = vld [vmem:[#allocation6 + $0x798] sm:$0xff]  ;;  %v3472_v57 = vpack.c.bf16 %v2674_v51, %v2673_v50  ;;  %v2697_v49 = vld [vmem:[#allocation8 + $0x160] sm:$0xff]  ;;  %v2698_v51 = vld [vmem:[#allocation8 + $0x168] sm:$0xff] }
 0x23f   :  { %3309 = vmatprep.subr.bf16.mxu0 %v3308_v1  ;;  %3437 = vmatprep.subr.bf16.mxu1 %v3436_v2  ;;  %v2312_v62 = vld [vmem:[#allocation6 + $0x7b8] sm:$0xff]  ;;  %v2305_v1 = vld [vmem:[#allocation6 + $0x780] sm:$0xff] }
 0x240   :  { %v2309_v2 = vld [vmem:[#allocation6 + $0x7a0] sm:$0xff]  ;;  %v3456_v4 = vpack.c.bf16 %v2312_v62, %v2308_v61  ;;  %v2675_v61 = vld [vmem:[#allocation8 + $0xb0] sm:$0xff]  ;;  %v2676_v62 = vld [vmem:[#allocation8 + $0xb8] sm:$0xff] }
 0x241   :  { %v3330_v11 = vpack.c.bf16 %v2309_v2, %v2305_v1  ;;  %v2659_v2 = vld [vmem:[#allocation8 + $0x30] sm:$0xff] }
 0x242   :  { %3311 = vmatpush1.bf16.msra.mxu0 %v3310_v9  ;;  %3439 = vmatpush1.bf16.msra.mxu1 %v3438_v10  ;;  %v2316_v9 = vld [vmem:[#allocation6 + $0x7d8] sm:$0xff] }
 0x243   :  { %3313 = vmatprep.subr.bf16.mxu0 %v3312_v13  ;;  %3441 = vmatprep.subr.bf16.mxu1 %v3440_v14  ;;  %v2320_v10 = vld [vmem:[#allocation6 + $0x7f8] sm:$0xff]  ;;  %v2313_v13 = vld [vmem:[#allocation6 + $0x7c0] sm:$0xff] }
 0x244   :  { %v2317_v14 = vld [vmem:[#allocation6 + $0x7e0] sm:$0xff]  ;;  %v3460_v17 = vpack.c.bf16 %v2320_v10, %v2316_v9  ;;  %v2678_v9 = vld [vmem:[#allocation8 + $0xc8] sm:$0xff] }
 0x245   :  { %v3334_v27 = vpack.c.bf16 %v2317_v14, %v2313_v13  ;;  %v2709_v10 = vld [vmem:[#allocation8 + $0x1c0] sm:$0xff]  ;;  %v3510_v13 = vpack.c.bf16 %v2692_v7, %v2691_v6 }
 0x246   :  { %3315 = vmatpush1.bf16.msra.mxu0 %v3314_v25  ;;  %3443 = vmatpush1.bf16.msra.mxu1 %v3442_v26  ;;  %v2701_v25 = vld [vmem:[#allocation8 + $0x180] sm:$0xff]  ;;  %v2702_v26 = vld [vmem:[#allocation8 + $0x188] sm:$0xff] }
 0x247   :  { %3317 = vmatprep.subr.bf16.mxu0 %v3316_v29  ;;  %3445 = vmatprep.subr.bf16.mxu1 %v3444_v30  ;;  %v2653_v29 = vld [vmem:[#allocation8] sm:$0xff]  ;;  %v2654_v30 = vld [vmem:[#allocation8 + $0x8] sm:$0xff]  ;;  %v3496_v15 = vpack.c.bf16 %v2702_v26, %v2701_v25  ;;  %v2680_v25 = vld [vmem:[#allocation8 + $0xd8] sm:$0xff] }
 0x248   :  { %v3466_v37 = vpack.c.bf16 %v2654_v30, %v2653_v29  ;;  %v2661_v14 = vld [vmem:[#allocation8 + $0x40] sm:$0xff]  ;;  %v2711_v26 = vld [vmem:[#allocation8 + $0x1d0] sm:$0xff]  ;;  %v3514_v29 = vpack.c.bf16 %v2694_v23, %v2693_v22 }
 0x249   :  { %v2663_v30 = vld [vmem:[#allocation8 + $0x50] sm:$0xff] }
 0x24a   :  { %3319 = vmatpush1.bf16.msra.mxu0 %v3318_v36  ;;  %3447 = vmatpush1.bf16.msra.mxu1 %v3446_v20  ;;  %v2703_v36 = vld [vmem:[#allocation8 + $0x190] sm:$0xff]  ;;  %v2704_v20 = vld [vmem:[#allocation8 + $0x198] sm:$0xff] }
 0x24b   :  { %3321 = vmatprep.subr.bf16.mxu0 %v3320_v44  ;;  %3449 = vmatprep.subr.bf16.mxu1 %v3448_v45  ;;  %v2655_v44 = vld [vmem:[#allocation8 + $0x10] sm:$0xff]  ;;  %v2656_v45 = vld [vmem:[#allocation8 + $0x18] sm:$0xff]  ;;  %v3500_v47 = vpack.c.bf16 %v2704_v20, %v2703_v36  ;;  %v2682_v36 = vld [vmem:[#allocation8 + $0xe8] sm:$0xff] }
 0x24c   :  { %v3470_v21 = vpack.c.bf16 %v2656_v45, %v2655_v44  ;;  %v2713_v20 = vld [vmem:[#allocation8 + $0x1e0] sm:$0xff]  ;;  %v3518_v44 = vpack.c.bf16 %v2696_v34, %v2695_v33  ;;  %v3488_v45 = vpack.c.bf16 %v2682_v36, %v2681_v35 }
 0x24e   :  { %3323 = vmatpush1.bf16.msra.mxu0 %v3322_v52  ;;  %3451 = vmatpush1.bf16.msra.mxu1 %v3450_v53  ;;  %v2705_v52 = vld [vmem:[#allocation8 + $0x1a0] sm:$0xff]  ;;  %v2706_v53 = vld [vmem:[#allocation8 + $0x1a8] sm:$0xff] }
 0x24f   :  { %3325 = vmatprep.subr.bf16.mxu0 %v3324_v55  ;;  %3453 = vmatprep.subr.bf16.mxu1 %v3452_v56  ;;  %v2657_v55 = vld [vmem:[#allocation8 + $0x20] sm:$0xff]  ;;  %v2658_v56 = vld [vmem:[#allocation8 + $0x28] sm:$0xff]  ;;  %v3504_v58 = vpack.c.bf16 %v2706_v53, %v2705_v52  ;;  %v3522_v52 = vpack.c.bf16 %v2698_v51, %v2697_v49  ;;  %v2683_v53 = vld [vmem:[#allocation8 + $0xf0] sm:$0xff] }
 0x250   :  { %v3474_v1 = vpack.c.bf16 %v2658_v56, %v2657_v55  ;;  %v2716_v56 = vld [vmem:[#allocation8 + $0x1f8] sm:$0xff] }
 0x252   :  { %3327 = vmatpush1.bf16.msra.mxu0 %v3326_v63  ;;  %3455 = vmatpush1.bf16.msra.mxu1 %v3454_v0  ;;  %v2707_v63 = vld [vmem:[#allocation8 + $0x1b0] sm:$0xff]  ;;  %v2708_v0 = vld [vmem:[#allocation8 + $0x1b8] sm:$0xff] }
 0x253   :  { %3329 = vmatprep.subr.bf16.mxu0 %v3328_v3  ;;  %3457 = vmatprep.subr.bf16.mxu1 %v3456_v4  ;;  %v2660_v3 = vld [vmem:[#allocation8 + $0x38] sm:$0xff]  ;;  %v3476_v4 = vpack.c.bf16 %v2676_v62, %v2675_v61  ;;  %v3508_v5 = vpack.c.bf16 %v2708_v0, %v2707_v63  ;;  %v2699_v61 = vld [vmem:[#allocation8 + $0x170] sm:$0xff]  ;;  %v2321_v0 = vld [vmem:[%s4223_s4] sm:$0xf] }
 0x254   :  { %v2700_v62 = vld [vmem:[#allocation8 + $0x178] sm:$0xff] }
 0x255   :  { %v3526_v63 = vpack.c.bf16 %v2700_v62, %v2699_v61 }
 0x256   :  { %3331 = vmatpush1.bf16.msra.mxu0 %v3330_v11  ;;  %3459 = vmatpush1.bf16.msra.mxu1 %v3458_v12  ;;  %v2710_v11 = vld [vmem:[#allocation8 + $0x1c8] sm:$0xff]  ;;  %v3478_v12 = vpack.c.bf16 %v2660_v3, %v2659_v2  ;;  %v2330_v2 = vrot.slane %v2321_v0, %v2035_v39  ;;  %v2338_v3 = vrot.slane %v2321_v0, %v2043_v41 }
 0x257   :  { %3333 = vmatprep.subr.bf16.mxu0 %v3332_v16  ;;  %3461 = vmatprep.subr.bf16.mxu1 %v3460_v17  ;;  %v2662_v16 = vld [vmem:[#allocation8 + $0x48] sm:$0xff]  ;;  %v3480_v17 = vpack.c.bf16 %v2678_v9, %v2677_v8  ;;  %v3512_v18 = vpack.c.bf16 %v2710_v11, %v2709_v10 }
 0x25a   :  { %3335 = vmatpush1.bf16.msra.mxu0 %v3334_v27  ;;  %3463 = vmatpush1.bf16.msra.mxu1 %v3462_v28  ;;  %v2712_v27 = vld [vmem:[#allocation8 + $0x1d8] sm:$0xff]  ;;  %v3482_v28 = vpack.c.bf16 %v2662_v16, %v2661_v14 }
 0x25b   :  { %3465 = vmatprep.subr.bf16.mxu0 %v3464_v31  ;;  %3497 = vmatprep.subr.bf16.mxu1 %v3496_v15  ;;  %v2664_v31 = vld [vmem:[#allocation8 + $0x58] sm:$0xff]  ;;  %v3484_v15 = vpack.c.bf16 %v2680_v25, %v2679_v24  ;;  %v3516_v32 = vpack.c.bf16 %v2712_v27, %v2711_v26 }
 0x25d   :  { %2501 = vmatmul.mubr.f32.vlgmr.msra.gmra.mrb[4].mxu0 %v4187_v19  ;;  %2643 = vmatmul.mubr.f32.vlgmr.msra.gmra.mrb[4].mxu1 %v4187_v19  ;;  %v3506_v19 = vpack.c.bf16 %v2690_v60, %v2689_v59 }
 0x25e   :  { %3467 = vmatpush3.bf16.msra.mxu0 %v3466_v37  ;;  %3499 = vmatpush3.bf16.msra.mxu1 %v3498_v42  ;;  %v2714_v37 = vld [vmem:[#allocation8 + $0x1e8] sm:$0xff]  ;;  %v3486_v42 = vpack.c.bf16 %v2664_v31, %v2663_v30 }
 0x25f   :  { %3469 = vmatprep.subr.bf16.mxu0 %v3468_v46  ;;  %3501 = vmatprep.subr.bf16.mxu1 %v3500_v47  ;;  %v3520_v46 = vpack.c.bf16 %v2714_v37, %v2713_v20  ;;  %v2665_v47 = vld [vmem:[#allocation8 + $0x60] sm:$0xff] }
 0x260   :  { %v3490_v50 = vpack.c.bf16 %v2666_v48, %v2665_v47 }
 0x262   :  { %3471 = vmatpush3.bf16.msra.mxu0 %v3470_v21  ;;  %3503 = vmatpush3.bf16.msra.mxu1 %v3502_v54  ;;  %v2684_v21 = vld [vmem:[#allocation8 + $0xf8] sm:$0xff]  ;;  %v2715_v54 = vld [vmem:[#allocation8 + $0x1f0] sm:$0xff] }
 0x263   :  { %3473 = vmatprep.subr.bf16.mxu0 %v3472_v57  ;;  %3505 = vmatprep.subr.bf16.mxu1 %v3504_v58  ;;  %v3492_v55 = vpack.c.bf16 %v2684_v21, %v2683_v53  ;;  %v2667_v57 = vld [vmem:[#allocation8 + $0x70] sm:$0xff]  ;;  %v2668_v58 = vld [vmem:[#allocation8 + $0x78] sm:$0xff]  ;;  %v3524_v59 = vpack.c.bf16 %v2716_v56, %v2715_v54 }
 0x264   :  { %v3494_v60 = vpack.c.bf16 %v2668_v58, %v2667_v57 }
 0x266   :  { %3475 = vmatpush3.bf16.msra.mxu0 %v3474_v1  ;;  %3507 = vmatpush3.bf16.msra.mxu1 %v3506_v19  ;;  %v2326_v1 = vrot.slane %v2321_v0, %v2031_v38  ;;  %v2334_v19 = vrot.slane %v2321_v0, %v2039_v40 }
 0x267   :  { %3477 = vmatprep.subr.bf16.mxu0 %v3476_v4  ;;  %3509 = vmatprep.subr.bf16.mxu1 %v3508_v5 }
 0x26a   :  { %3479 = vmatpush3.bf16.msra.mxu0 %v3478_v12  ;;  %3511 = vmatpush3.bf16.msra.mxu1 %v3510_v13 }
 0x26b   :  { %3481 = vmatprep.subr.bf16.mxu0 %v3480_v17  ;;  %3513 = vmatprep.subr.bf16.mxu1 %v3512_v18 }
 0x26e   :  { %3483 = vmatpush3.bf16.msra.mxu0 %v3482_v28  ;;  %3515 = vmatpush3.bf16.msra.mxu1 %v3514_v29 }
 0x26f   :  { %3485 = vmatprep.subr.bf16.mxu0 %v3484_v15  ;;  %3517 = vmatprep.subr.bf16.mxu1 %v3516_v32 }
 0x272   :  { %3487 = vmatpush3.bf16.msra.mxu0 %v3486_v42  ;;  %3519 = vmatpush3.bf16.msra.mxu1 %v3518_v44 }
 0x273   :  { %3489 = vmatprep.subr.bf16.mxu0 %v3488_v45  ;;  %3521 = vmatprep.subr.bf16.mxu1 %v3520_v46 }
 0x276   :  { %3491 = vmatpush3.bf16.msra.mxu0 %v3490_v50  ;;  %3523 = vmatpush3.bf16.msra.mxu1 %v3522_v52 }
 0x277   :  { %3493 = vmatprep.subr.bf16.mxu0 %v3492_v55  ;;  %3525 = vmatprep.subr.bf16.mxu1 %v3524_v59 }
 0x27a   :  { %3495 = vmatpush3.bf16.msra.mxu0 %v3494_v60  ;;  %3527 = vmatpush3.bf16.msra.mxu1 %v3526_v63 }
 0x330   :  { %v2502_v4 = vpop.f32.mrb[4].mxu0  ;;  %v2644_v5 = vpop.f32.mrb[4].mxu1 }
 0x331   :  { %v3528_v6 = vadd.f32 %v2502_v4, %v2326_v1  ;;  %v3530_v7 = vadd.f32 %v2644_v5, %v2334_v19  ;;  %v2504_v8 = vpop.f32.mrb[5].mxu0  ;;  %v2646_v9 = vpop.f32.mrb[5].mxu1 }
 0x332   :  { %v3529_v10 = vadd.f32 %v2504_v8, %v2330_v2  ;;  %v3531_v11 = vadd.f32 %v2646_v9, %v2338_v3 }
 0x333   :  { %v2649_v38 = vmax.f32 %v3528_v6, 0.0  ;;  %v2651_v14 = vmax.f32 %v3530_v7, 0.0 }
 0x334   :  { %v2650_v12 = vmax.f32 %v3529_v10, 0.0  ;;  %v2652_v13 = vmax.f32 %v3531_v11, 0.0 }
 0x336   :  { %2788 = vmatprep.mubr.f32.mxu0 %v2650_v12  ;;  %2858 = vmatprep.mubr.f32.mxu1 %v2652_v13 }
 0x337   :  { %2789 = vmatmul.mubr.f32.vlgmr.msra.gmra.mrb[6].mxu0 %v2649_v38  ;;  %2859 = vmatmul.mubr.f32.vlgmr.msra.gmra.mrb[6].mxu1 %v2651_v14 }
 0x40a   :  { %v3170_v39 = vpop.f32.mrb[6].mxu0  ;;  %v3205_v40 = vpop.f32.mrb[6].mxu1 }
 0x40b   :  { %v3171_v41 = vpop.f32.mrb[7].mxu0  ;;  %v3206_v16 = vpop.f32.mrb[7].mxu1 }
 0x40c   :  { %v3172_v17 = vadd.f32 %v3171_v41, %v3170_v39  ;;  %v3207_v18 = vadd.f32 %v3206_v16, %v3205_v40 }
 0x40e   :  { %v2791_v22 = vadd.f32 %v3172_v17, %v3137_v43 }
 0x410   :  { %v2861_v23 = vadd.f32 %v3207_v18, %v2791_v22 }
 0x412   :  { %2864 = vst [vmem:[#allocation9] sm:$0x3] %v2861_v23 }
 0x413   :  { %4034 = shalt.err (!%p4031_p0)
}
 0x414   :  { %s4035_s6 = scalar_lea.hbm %s4226_s7, 32 }
 0x415   :  { %p4036_p1 = scmp.ne.s32.totalorder %s4226_s7, %s4035_s6  ;;  %p4039_p2 = scmp.lt.u32.totalorder %s4035_s6, %s4226_s7 }
 0x417   :  { %p4041_p3 = pnand %p4039_p2, %p4036_p1 }
 0x419   :  { %4044 = shalt.err (!%p4041_p3)
}
 0x41a   :  { %2874 = dma.vmem_to_hbm [thread:$0]  %s2872_s23, 32, %s4226_s7, [#allocation5]  }
 0x41b   :  { %4049 = dma.done.wait [#allocation5], 32  }
 0x41c   :  { %4050 = vsyncadd [#allocation5], 4294967264 }
 0x41d   :  { %2878 = vsyncpa [#allocation4], 1 }
 0x41e   :  { %2879 = vsyncpa [#allocation7], 1 }
 0x41f   :  { %2880 = vsyncpa [#allocation5], 1 }

</bundles_post_ra>
